<compile_context>
chip_gen: v5e
topology: v5e:2x2
jax: 0.10.0
libtpu: 0.0.40
codegen_flags: <defaults>
</compile_context>

<pallas_src>
import numpy as np
import jax
import jax.numpy as jnp
from jax.experimental import pallas as pl
from jax.experimental.pallas import tpu as pltpu


def _flip_rev(x):
    """Reverse the minor (lane) axis: pure data movement, exact."""
    return jax.lax.rev(x, dimensions=(x.ndim - 1,))


def _flip_slice_concat(x):
    """Fallback reversal built only from static slices + concatenate
    (used only if lax.rev has no Mosaic lowering on this jax build)."""
    w = x.shape[-1]
    return jnp.concatenate([x[..., i:i + 1] for i in range(w - 1, -1, -1)],
                           axis=-1)


def _make_kernel(channel_counts, negate_flags, flip_impl):
    """Build the fused kernel.

    Ref order (after the scalar-prefetch ref): one (B, M_i, H, W) input block
    per field, then one (B, M_i, H, W) output block per field.
    """
    n_fields = len(channel_counts)

    def kernel(flip_idx_ref, *refs):
        del flip_idx_ref  # only consumed by the index_maps (keypoint gather)
        in_refs = refs[:n_fields]
        out_refs = refs[n_fields:]
        for x_ref, o_ref, m, negate in zip(in_refs, out_refs,
                                           channel_counts, negate_flags):
            y = flip_impl(x_ref[...])           # (B, M, H, W), W reversed
            if negate:
                # Only the regression x-offset channel gets the sign flip.
                o_ref[:, 0:1] = -y[:, 0:1]
                if m > 1:
                    o_ref[:, 1:] = y[:, 1:]
            else:
                o_ref[...] = y

    return kernel


def _run_hflip(fields, flip_indices, negate_index, flip_impl):
    """Single fused Pallas pass over all fields."""
    B, K = fields[0].shape[0], fields[0].shape[1]
    H, W = fields[0].shape[-2], fields[0].shape[-1]

    xs, channel_counts, negate_flags = [], [], []
    for i, f in enumerate(fields):
        assert f.shape[0] == B and f.shape[1] == K and f.shape[-2:] == (H, W)
        mid = f.shape[2:-2]
        m = int(np.prod(mid)) if mid else 1
        xs.append(f.reshape(B, K, m, H, W))
        channel_counts.append(m)
        negate_flags.append(i == negate_index)

    # Per grid step k: read keypoint flip_indices[k] of every field, write
    # keypoint k of every field.  Block = full (B, M, H, W) slab per field.
    in_specs = [
        pl.BlockSpec((B, None, m, H, W), lambda k, fi: (0, fi[k], 0, 0, 0))
        for m in channel_counts
    ]
    out_specs = [
        pl.BlockSpec((B, None, m, H, W), lambda k, fi: (0, k, 0, 0, 0))
        for m in channel_counts
    ]
    out_shapes = tuple(
        jax.ShapeDtypeStruct((B, K, m, H, W), f.dtype)
        for m, f in zip(channel_counts, fields)
    )

    outs = pl.pallas_call(
        _make_kernel(tuple(channel_counts), tuple(negate_flags), flip_impl),
        out_shape=out_shapes,
        grid_spec=pltpu.PrefetchScalarGridSpec(
            num_scalar_prefetch=1,       # flip_indices
            grid=(K,),
            in_specs=in_specs,
            out_specs=out_specs,
        ),
        compiler_params=pltpu.CompilerParams(
            dimension_semantics=("parallel",)),  # independent K blocks (v7x 2-TC)
    )(jnp.asarray(flip_indices, jnp.int32), *xs)

    return [o.reshape(f.shape) for o, f in zip(outs, fields)]


class PifHFlip:
    """JAX/Pallas port of openpifpaf.network.heads.PifHFlip."""

    def __init__(self, keypoints, hflip):
        self.flip_indices = np.array(
            [keypoints.index(hflip[kp_name]) if kp_name in hflip else kp_i
             for kp_i, kp_name in enumerate(keypoints)],
            dtype=np.int32)

    def __call__(self, *args):
        fields = list(args)
        try:
            out = _run_hflip(fields, self.flip_indices, 1, _flip_rev)
            jax.block_until_ready(out)
            return out
        except Exception:
            # Defensive fallback for jax builds lacking a lax.rev lowering in
            # Mosaic; same exact semantics, slices + concat only.
            out = _run_hflip(fields, self.flip_indices, 1, _flip_slice_concat)
            jax.block_until_ready(out)
            return out


def _reference(fields, flip_indices):
    """Plain-JAX reference matching the PyTorch forward."""
    out = []
    for f in fields:
        f = jnp.take(f, jnp.asarray(flip_indices), axis=1)
        f = jnp.flip(f, axis=-1)
        out.append(f)
    out[1] = out[1].at[:, :, 0, :, :].multiply(-1.0)
    return out


if __name__ == "__main__":
    keypoints = ['nose', 'left_eye', 'right_eye',
                 'left_wrist', 'right_wrist', 'pelvis']
    hflip = {'left_eye': 'right_eye', 'right_eye': 'left_eye',
             'left_wrist': 'right_wrist', 'right_wrist': 'left_wrist'}

    B, K, H, W = 2, len(keypoints), 16, 16

    key = jax.random.PRNGKey(0)
    k1, k2, k3 = jax.random.split(key, 3)
    conf = jax.random.normal(k1, (B, K, H, W), dtype=jnp.float32)
    reg = jax.random.normal(k2, (B, K, 2, H, W), dtype=jnp.float32)
    scale = jax.random.normal(k3, (B, K, H, W), dtype=jnp.float32)

    module = PifHFlip(keypoints, hflip)
    outs = module(conf, reg, scale)
    outs = jax.block_until_ready(outs)

    refs = _reference([conf, reg, scale], module.flip_indices)
    for o, r in zip(outs, refs):
        # Pure data movement + sign flip: results must be bit-exact.
        np.testing.assert_array_equal(np.asarray(o), np.asarray(r))

    print("KERNEL_OK")
</pallas_src>

<mosaic_0001>
module attributes {stable_mosaic.version = 11 : i64} {
  func.func @kernel(%arg0: i32, %arg1: memref<6xi32, #tpu.memory_space<smem>>, %arg2: memref<2x1x1x16x16xf32, #tpu.memory_space<vmem>>, %arg3: memref<2x1x2x16x16xf32, #tpu.memory_space<vmem>>, %arg4: memref<2x1x1x16x16xf32, #tpu.memory_space<vmem>>, %arg5: memref<2x1x1x16x16xf32, #tpu.memory_space<vmem>>, %arg6: memref<2x1x2x16x16xf32, #tpu.memory_space<vmem>>, %arg7: memref<2x1x1x16x16xf32, #tpu.memory_space<vmem>>) attributes {dimension_semantics = [#tpu.dimension_semantics<parallel>], iteration_bounds = array<i64: 6>, scalar_prefetch = 1 : i64, scratch_operands = 0 : i64, tpu.core_type = #tpu.core_type<tc>, window_params = [{transform_indices = @transform_0, window_bounds = array<i64: 2, 1, 1, 16, 16>}, {transform_indices = @transform_1, window_bounds = array<i64: 2, 1, 2, 16, 16>}, {transform_indices = @transform_2, window_bounds = array<i64: 2, 1, 1, 16, 16>}, {transform_indices = @transform_3, window_bounds = array<i64: 2, 1, 1, 16, 16>}, {transform_indices = @transform_4, window_bounds = array<i64: 2, 1, 2, 16, 16>}, {transform_indices = @transform_5, window_bounds = array<i64: 2, 1, 1, 16, 16>}]} {
    %c0 = arith.constant 0 : index
    %c0_0 = arith.constant 0 : index
    %c0_1 = arith.constant 0 : index
    %c0_2 = arith.constant 0 : index
    %c0_3 = arith.constant 0 : index
    %0 = vector.load %arg2[%c0, %c0_0, %c0_1, %c0_2, %c0_3] : memref<2x1x1x16x16xf32, #tpu.memory_space<vmem>>, vector<2x1x1x16x16xf32>
    %1 = vector.shape_cast %0 : vector<2x1x1x16x16xf32> to vector<2x1x16x16xf32>
    %2 = vector.extract_strided_slice %1 {offsets = [0, 0, 0, 15], sizes = [2, 1, 16, 1], strides = [1, 1, 1, 1]} : vector<2x1x16x16xf32> to vector<2x1x16x1xf32>
    %3 = vector.extract_strided_slice %1 {offsets = [0, 0, 0, 14], sizes = [2, 1, 16, 1], strides = [1, 1, 1, 1]} : vector<2x1x16x16xf32> to vector<2x1x16x1xf32>
    %4 = vector.extract_strided_slice %1 {offsets = [0, 0, 0, 13], sizes = [2, 1, 16, 1], strides = [1, 1, 1, 1]} : vector<2x1x16x16xf32> to vector<2x1x16x1xf32>
    %5 = vector.extract_strided_slice %1 {offsets = [0, 0, 0, 12], sizes = [2, 1, 16, 1], strides = [1, 1, 1, 1]} : vector<2x1x16x16xf32> to vector<2x1x16x1xf32>
    %6 = vector.extract_strided_slice %1 {offsets = [0, 0, 0, 11], sizes = [2, 1, 16, 1], strides = [1, 1, 1, 1]} : vector<2x1x16x16xf32> to vector<2x1x16x1xf32>
    %7 = vector.extract_strided_slice %1 {offsets = [0, 0, 0, 10], sizes = [2, 1, 16, 1], strides = [1, 1, 1, 1]} : vector<2x1x16x16xf32> to vector<2x1x16x1xf32>
    %8 = vector.extract_strided_slice %1 {offsets = [0, 0, 0, 9], sizes = [2, 1, 16, 1], strides = [1, 1, 1, 1]} : vector<2x1x16x16xf32> to vector<2x1x16x1xf32>
    %9 = vector.extract_strided_slice %1 {offsets = [0, 0, 0, 8], sizes = [2, 1, 16, 1], strides = [1, 1, 1, 1]} : vector<2x1x16x16xf32> to vector<2x1x16x1xf32>
    %10 = vector.extract_strided_slice %1 {offsets = [0, 0, 0, 7], sizes = [2, 1, 16, 1], strides = [1, 1, 1, 1]} : vector<2x1x16x16xf32> to vector<2x1x16x1xf32>
    %11 = vector.extract_strided_slice %1 {offsets = [0, 0, 0, 6], sizes = [2, 1, 16, 1], strides = [1, 1, 1, 1]} : vector<2x1x16x16xf32> to vector<2x1x16x1xf32>
    %12 = vector.extract_strided_slice %1 {offsets = [0, 0, 0, 5], sizes = [2, 1, 16, 1], strides = [1, 1, 1, 1]} : vector<2x1x16x16xf32> to vector<2x1x16x1xf32>
    %13 = vector.extract_strided_slice %1 {offsets = [0, 0, 0, 4], sizes = [2, 1, 16, 1], strides = [1, 1, 1, 1]} : vector<2x1x16x16xf32> to vector<2x1x16x1xf32>
    %14 = vector.extract_strided_slice %1 {offsets = [0, 0, 0, 3], sizes = [2, 1, 16, 1], strides = [1, 1, 1, 1]} : vector<2x1x16x16xf32> to vector<2x1x16x1xf32>
    %15 = vector.extract_strided_slice %1 {offsets = [0, 0, 0, 2], sizes = [2, 1, 16, 1], strides = [1, 1, 1, 1]} : vector<2x1x16x16xf32> to vector<2x1x16x1xf32>
    %16 = vector.extract_strided_slice %1 {offsets = [0, 0, 0, 1], sizes = [2, 1, 16, 1], strides = [1, 1, 1, 1]} : vector<2x1x16x16xf32> to vector<2x1x16x1xf32>
    %17 = vector.extract_strided_slice %1 {offsets = [0, 0, 0, 0], sizes = [2, 1, 16, 1], strides = [1, 1, 1, 1]} : vector<2x1x16x16xf32> to vector<2x1x16x1xf32>
    %18 = tpu.concatenate %2, %3, %4, %5, %6, %7, %8, %9, %10, %11, %12, %13, %14, %15, %16, %17 in 3 : vector<2x1x16x1xf32>, vector<2x1x16x1xf32>, vector<2x1x16x1xf32>, vector<2x1x16x1xf32>, vector<2x1x16x1xf32>, vector<2x1x16x1xf32>, vector<2x1x16x1xf32>, vector<2x1x16x1xf32>, vector<2x1x16x1xf32>, vector<2x1x16x1xf32>, vector<2x1x16x1xf32>, vector<2x1x16x1xf32>, vector<2x1x16x1xf32>, vector<2x1x16x1xf32>, vector<2x1x16x1xf32>, vector<2x1x16x1xf32> -> vector<2x1x16x16xf32>
    %c0_4 = arith.constant 0 : index
    %c0_5 = arith.constant 0 : index
    %c0_6 = arith.constant 0 : index
    %c0_7 = arith.constant 0 : index
    %c0_8 = arith.constant 0 : index
    %19 = vector.load %arg5[%c0_4, %c0_5, %c0_6, %c0_7, %c0_8] : memref<2x1x1x16x16xf32, #tpu.memory_space<vmem>>, vector<2x1x1x16x16xf32>
    %20 = vector.shape_cast %19 : vector<2x1x1x16x16xf32> to vector<2x1x16x16xf32>
    %21 = vector.shape_cast %18 : vector<2x1x16x16xf32> to vector<2x1x1x16x16xf32>
    tpu.vector_store %arg5[%c0_4, %c0_5, %c0_6, %c0_7, %c0_8], %21 {strides = array<i32>} : memref<2x1x1x16x16xf32, #tpu.memory_space<vmem>>, vector<2x1x1x16x16xf32>,
    %c0_9 = arith.constant 0 : index
    %c0_10 = arith.constant 0 : index
    %c0_11 = arith.constant 0 : index
    %c0_12 = arith.constant 0 : index
    %c0_13 = arith.constant 0 : index
    %22 = vector.load %arg3[%c0_9, %c0_10, %c0_11, %c0_12, %c0_13] : memref<2x1x2x16x16xf32, #tpu.memory_space<vmem>>, vector<2x1x2x16x16xf32>
    %23 = vector.shape_cast %22 : vector<2x1x2x16x16xf32> to vector<2x2x16x16xf32>
    %24 = vector.extract_strided_slice %23 {offsets = [0, 0, 0, 15], sizes = [2, 2, 16, 1], strides = [1, 1, 1, 1]} : vector<2x2x16x16xf32> to vector<2x2x16x1xf32>
    %25 = vector.extract_strided_slice %23 {offsets = [0, 0, 0, 14], sizes = [2, 2, 16, 1], strides = [1, 1, 1, 1]} : vector<2x2x16x16xf32> to vector<2x2x16x1xf32>
    %26 = vector.extract_strided_slice %23 {offsets = [0, 0, 0, 13], sizes = [2, 2, 16, 1], strides = [1, 1, 1, 1]} : vector<2x2x16x16xf32> to vector<2x2x16x1xf32>
    %27 = vector.extract_strided_slice %23 {offsets = [0, 0, 0, 12], sizes = [2, 2, 16, 1], strides = [1, 1, 1, 1]} : vector<2x2x16x16xf32> to vector<2x2x16x1xf32>
    %28 = vector.extract_strided_slice %23 {offsets = [0, 0, 0, 11], sizes = [2, 2, 16, 1], strides = [1, 1, 1, 1]} : vector<2x2x16x16xf32> to vector<2x2x16x1xf32>
    %29 = vector.extract_strided_slice %23 {offsets = [0, 0, 0, 10], sizes = [2, 2, 16, 1], strides = [1, 1, 1, 1]} : vector<2x2x16x16xf32> to vector<2x2x16x1xf32>
    %30 = vector.extract_strided_slice %23 {offsets = [0, 0, 0, 9], sizes = [2, 2, 16, 1], strides = [1, 1, 1, 1]} : vector<2x2x16x16xf32> to vector<2x2x16x1xf32>
    %31 = vector.extract_strided_slice %23 {offsets = [0, 0, 0, 8], sizes = [2, 2, 16, 1], strides = [1, 1, 1, 1]} : vector<2x2x16x16xf32> to vector<2x2x16x1xf32>
    %32 = vector.extract_strided_slice %23 {offsets = [0, 0, 0, 7], sizes = [2, 2, 16, 1], strides = [1, 1, 1, 1]} : vector<2x2x16x16xf32> to vector<2x2x16x1xf32>
    %33 = vector.extract_strided_slice %23 {offsets = [0, 0, 0, 6], sizes = [2, 2, 16, 1], strides = [1, 1, 1, 1]} : vector<2x2x16x16xf32> to vector<2x2x16x1xf32>
    %34 = vector.extract_strided_slice %23 {offsets = [0, 0, 0, 5], sizes = [2, 2, 16, 1], strides = [1, 1, 1, 1]} : vector<2x2x16x16xf32> to vector<2x2x16x1xf32>
    %35 = vector.extract_strided_slice %23 {offsets = [0, 0, 0, 4], sizes = [2, 2, 16, 1], strides = [1, 1, 1, 1]} : vector<2x2x16x16xf32> to vector<2x2x16x1xf32>
    %36 = vector.extract_strided_slice %23 {offsets = [0, 0, 0, 3], sizes = [2, 2, 16, 1], strides = [1, 1, 1, 1]} : vector<2x2x16x16xf32> to vector<2x2x16x1xf32>
    %37 = vector.extract_strided_slice %23 {offsets = [0, 0, 0, 2], sizes = [2, 2, 16, 1], strides = [1, 1, 1, 1]} : vector<2x2x16x16xf32> to vector<2x2x16x1xf32>
    %38 = vector.extract_strided_slice %23 {offsets = [0, 0, 0, 1], sizes = [2, 2, 16, 1], strides = [1, 1, 1, 1]} : vector<2x2x16x16xf32> to vector<2x2x16x1xf32>
    %39 = vector.extract_strided_slice %23 {offsets = [0, 0, 0, 0], sizes = [2, 2, 16, 1], strides = [1, 1, 1, 1]} : vector<2x2x16x16xf32> to vector<2x2x16x1xf32>
    %40 = tpu.concatenate %24, %25, %26, %27, %28, %29, %30, %31, %32, %33, %34, %35, %36, %37, %38, %39 in 3 : vector<2x2x16x1xf32>, vector<2x2x16x1xf32>, vector<2x2x16x1xf32>, vector<2x2x16x1xf32>, vector<2x2x16x1xf32>, vector<2x2x16x1xf32>, vector<2x2x16x1xf32>, vector<2x2x16x1xf32>, vector<2x2x16x1xf32>, vector<2x2x16x1xf32>, vector<2x2x16x1xf32>, vector<2x2x16x1xf32>, vector<2x2x16x1xf32>, vector<2x2x16x1xf32>, vector<2x2x16x1xf32>, vector<2x2x16x1xf32> -> vector<2x2x16x16xf32>
    %41 = vector.extract_strided_slice %40 {offsets = [0, 0, 0, 0], sizes = [2, 1, 16, 16], strides = [1, 1, 1, 1]} : vector<2x2x16x16xf32> to vector<2x1x16x16xf32>
    %cst = arith.constant 0.000000e+00 : f32
    %42 = vector.broadcast %cst : f32 to vector<2x1x16x16xf32>
    %43 = arith.subf %42, %41 : vector<2x1x16x16xf32>
    %c0_14 = arith.constant 0 : index
    %c0_15 = arith.constant 0 : index
    %c0_16 = arith.constant 0 : index
    %c0_17 = arith.constant 0 : index
    %c0_18 = arith.constant 0 : index
    %44 = vector.load %arg6[%c0_14, %c0_15, %c0_16, %c0_17, %c0_18] : memref<2x1x2x16x16xf32, #tpu.memory_space<vmem>>, vector<2x1x1x16x16xf32>
    %45 = vector.shape_cast %44 : vector<2x1x1x16x16xf32> to vector<2x1x16x16xf32>
    %46 = vector.shape_cast %43 : vector<2x1x16x16xf32> to vector<2x1x1x16x16xf32>
    tpu.vector_store %arg6[%c0_14, %c0_15, %c0_16, %c0_17, %c0_18], %46 {strides = array<i32>} : memref<2x1x2x16x16xf32, #tpu.memory_space<vmem>>, vector<2x1x1x16x16xf32>,
    %47 = vector.extract_strided_slice %40 {offsets = [0, 1, 0, 0], sizes = [2, 1, 16, 16], strides = [1, 1, 1, 1]} : vector<2x2x16x16xf32> to vector<2x1x16x16xf32>
    %c0_19 = arith.constant 0 : index
    %c0_20 = arith.constant 0 : index
    %c1 = arith.constant 1 : index
    %c0_21 = arith.constant 0 : index
    %c0_22 = arith.constant 0 : index
    %48 = vector.load %arg6[%c0_19, %c0_20, %c1, %c0_21, %c0_22] : memref<2x1x2x16x16xf32, #tpu.memory_space<vmem>>, vector<2x1x1x16x16xf32>
    %49 = vector.shape_cast %48 : vector<2x1x1x16x16xf32> to vector<2x1x16x16xf32>
    %50 = vector.shape_cast %47 : vector<2x1x16x16xf32> to vector<2x1x1x16x16xf32>
    tpu.vector_store %arg6[%c0_19, %c0_20, %c1, %c0_21, %c0_22], %50 {strides = array<i32>} : memref<2x1x2x16x16xf32, #tpu.memory_space<vmem>>, vector<2x1x1x16x16xf32>,
    %c0_23 = arith.constant 0 : index
    %c0_24 = arith.constant 0 : index
    %c0_25 = arith.constant 0 : index
    %c0_26 = arith.constant 0 : index
    %c0_27 = arith.constant 0 : index
    %51 = vector.load %arg4[%c0_23, %c0_24, %c0_25, %c0_26, %c0_27] : memref<2x1x1x16x16xf32, #tpu.memory_space<vmem>>, vector<2x1x1x16x16xf32>
    %52 = vector.shape_cast %51 : vector<2x1x1x16x16xf32> to vector<2x1x16x16xf32>
    %53 = vector.extract_strided_slice %52 {offsets = [0, 0, 0, 15], sizes = [2, 1, 16, 1], strides = [1, 1, 1, 1]} : vector<2x1x16x16xf32> to vector<2x1x16x1xf32>
    %54 = vector.extract_strided_slice %52 {offsets = [0, 0, 0, 14], sizes = [2, 1, 16, 1], strides = [1, 1, 1, 1]} : vector<2x1x16x16xf32> to vector<2x1x16x1xf32>
    %55 = vector.extract_strided_slice %52 {offsets = [0, 0, 0, 13], sizes = [2, 1, 16, 1], strides = [1, 1, 1, 1]} : vector<2x1x16x16xf32> to vector<2x1x16x1xf32>
    %56 = vector.extract_strided_slice %52 {offsets = [0, 0, 0, 12], sizes = [2, 1, 16, 1], strides = [1, 1, 1, 1]} : vector<2x1x16x16xf32> to vector<2x1x16x1xf32>
    %57 = vector.extract_strided_slice %52 {offsets = [0, 0, 0, 11], sizes = [2, 1, 16, 1], strides = [1, 1, 1, 1]} : vector<2x1x16x16xf32> to vector<2x1x16x1xf32>
    %58 = vector.extract_strided_slice %52 {offsets = [0, 0, 0, 10], sizes = [2, 1, 16, 1], strides = [1, 1, 1, 1]} : vector<2x1x16x16xf32> to vector<2x1x16x1xf32>
    %59 = vector.extract_strided_slice %52 {offsets = [0, 0, 0, 9], sizes = [2, 1, 16, 1], strides = [1, 1, 1, 1]} : vector<2x1x16x16xf32> to vector<2x1x16x1xf32>
    %60 = vector.extract_strided_slice %52 {offsets = [0, 0, 0, 8], sizes = [2, 1, 16, 1], strides = [1, 1, 1, 1]} : vector<2x1x16x16xf32> to vector<2x1x16x1xf32>
    %61 = vector.extract_strided_slice %52 {offsets = [0, 0, 0, 7], sizes = [2, 1, 16, 1], strides = [1, 1, 1, 1]} : vector<2x1x16x16xf32> to vector<2x1x16x1xf32>
    %62 = vector.extract_strided_slice %52 {offsets = [0, 0, 0, 6], sizes = [2, 1, 16, 1], strides = [1, 1, 1, 1]} : vector<2x1x16x16xf32> to vector<2x1x16x1xf32>
    %63 = vector.extract_strided_slice %52 {offsets = [0, 0, 0, 5], sizes = [2, 1, 16, 1], strides = [1, 1, 1, 1]} : vector<2x1x16x16xf32> to vector<2x1x16x1xf32>
    %64 = vector.extract_strided_slice %52 {offsets = [0, 0, 0, 4], sizes = [2, 1, 16, 1], strides = [1, 1, 1, 1]} : vector<2x1x16x16xf32> to vector<2x1x16x1xf32>
    %65 = vector.extract_strided_slice %52 {offsets = [0, 0, 0, 3], sizes = [2, 1, 16, 1], strides = [1, 1, 1, 1]} : vector<2x1x16x16xf32> to vector<2x1x16x1xf32>
    %66 = vector.extract_strided_slice %52 {offsets = [0, 0, 0, 2], sizes = [2, 1, 16, 1], strides = [1, 1, 1, 1]} : vector<2x1x16x16xf32> to vector<2x1x16x1xf32>
    %67 = vector.extract_strided_slice %52 {offsets = [0, 0, 0, 1], sizes = [2, 1, 16, 1], strides = [1, 1, 1, 1]} : vector<2x1x16x16xf32> to vector<2x1x16x1xf32>
    %68 = vector.extract_strided_slice %52 {offsets = [0, 0, 0, 0], sizes = [2, 1, 16, 1], strides = [1, 1, 1, 1]} : vector<2x1x16x16xf32> to vector<2x1x16x1xf32>
    %69 = tpu.concatenate %53, %54, %55, %56, %57, %58, %59, %60, %61, %62, %63, %64, %65, %66, %67, %68 in 3 : vector<2x1x16x1xf32>, vector<2x1x16x1xf32>, vector<2x1x16x1xf32>, vector<2x1x16x1xf32>, vector<2x1x16x1xf32>, vector<2x1x16x1xf32>, vector<2x1x16x1xf32>, vector<2x1x16x1xf32>, vector<2x1x16x1xf32>, vector<2x1x16x1xf32>, vector<2x1x16x1xf32>, vector<2x1x16x1xf32>, vector<2x1x16x1xf32>, vector<2x1x16x1xf32>, vector<2x1x16x1xf32>, vector<2x1x16x1xf32> -> vector<2x1x16x16xf32>
    %c0_28 = arith.constant 0 : index
    %c0_29 = arith.constant 0 : index
    %c0_30 = arith.constant 0 : index
    %c0_31 = arith.constant 0 : index
    %c0_32 = arith.constant 0 : index
    %70 = vector.load %arg7[%c0_28, %c0_29, %c0_30, %c0_31, %c0_32] : memref<2x1x1x16x16xf32, #tpu.memory_space<vmem>>, vector<2x1x1x16x16xf32>
    %71 = vector.shape_cast %70 : vector<2x1x1x16x16xf32> to vector<2x1x16x16xf32>
    %72 = vector.shape_cast %69 : vector<2x1x16x16xf32> to vector<2x1x1x16x16xf32>
    tpu.vector_store %arg7[%c0_28, %c0_29, %c0_30, %c0_31, %c0_32], %72 {strides = array<i32>} : memref<2x1x1x16x16xf32, #tpu.memory_space<vmem>>, vector<2x1x1x16x16xf32>,
    return
  }
  func.func @transform_0(%arg0: i32, %arg1: memref<6xi32, #tpu.memory_space<smem>>) -> (i32, i32, i32, i32, i32) {
    %0 = arith.index_cast %arg0 : i32 to index
    %1 = memref.load %arg1[%0] : memref<6xi32, #tpu.memory_space<smem>>
    %c0_i32 = arith.constant 0 : i32
    %c0_i32_0 = arith.constant 0 : i32
    %c0_i32_1 = arith.constant 0 : i32
    %c0_i32_2 = arith.constant 0 : i32
    %c0_i32_3 = arith.constant 0 : i32
    return %c0_i32, %1, %c0_i32_0, %c0_i32_1, %c0_i32_2 : i32, i32, i32, i32, i32
  }
  func.func @transform_1(%arg0: i32, %arg1: memref<6xi32, #tpu.memory_space<smem>>) -> (i32, i32, i32, i32, i32) {
    %0 = arith.index_cast %arg0 : i32 to index
    %1 = memref.load %arg1[%0] : memref<6xi32, #tpu.memory_space<smem>>
    %c0_i32 = arith.constant 0 : i32
    %c0_i32_0 = arith.constant 0 : i32
    %c0_i32_1 = arith.constant 0 : i32
    %c0_i32_2 = arith.constant 0 : i32
    %c0_i32_3 = arith.constant 0 : i32
    return %c0_i32, %1, %c0_i32_0, %c0_i32_1, %c0_i32_2 : i32, i32, i32, i32, i32
  }
  func.func @transform_2(%arg0: i32, %arg1: memref<6xi32, #tpu.memory_space<smem>>) -> (i32, i32, i32, i32, i32) {
    %0 = arith.index_cast %arg0 : i32 to index
    %1 = memref.load %arg1[%0] : memref<6xi32, #tpu.memory_space<smem>>
    %c0_i32 = arith.constant 0 : i32
    %c0_i32_0 = arith.constant 0 : i32
    %c0_i32_1 = arith.constant 0 : i32
    %c0_i32_2 = arith.constant 0 : i32
    %c0_i32_3 = arith.constant 0 : i32
    return %c0_i32, %1, %c0_i32_0, %c0_i32_1, %c0_i32_2 : i32, i32, i32, i32, i32
  }
  func.func @transform_3(%arg0: i32, %arg1: memref<6xi32, #tpu.memory_space<smem>>) -> (i32, i32, i32, i32, i32) {
    %c0_i32 = arith.constant 0 : i32
    %c0_i32_0 = arith.constant 0 : i32
    %c0_i32_1 = arith.constant 0 : i32
    %c0_i32_2 = arith.constant 0 : i32
    %c0_i32_3 = arith.constant 0 : i32
    return %c0_i32, %arg0, %c0_i32_0, %c0_i32_1, %c0_i32_2 : i32, i32, i32, i32, i32
  }
  func.func @transform_4(%arg0: i32, %arg1: memref<6xi32, #tpu.memory_space<smem>>) -> (i32, i32, i32, i32, i32) {
    %c0_i32 = arith.constant 0 : i32
    %c0_i32_0 = arith.constant 0 : i32
    %c0_i32_1 = arith.constant 0 : i32
    %c0_i32_2 = arith.constant 0 : i32
    %c0_i32_3 = arith.constant 0 : i32
    return %c0_i32, %arg0, %c0_i32_0, %c0_i32_1, %c0_i32_2 : i32, i32, i32, i32, i32
  }
  func.func @transform_5(%arg0: i32, %arg1: memref<6xi32, #tpu.memory_space<smem>>) -> (i32, i32, i32, i32, i32) {
    %c0_i32 = arith.constant 0 : i32
    %c0_i32_0 = arith.constant 0 : i32
    %c0_i32_1 = arith.constant 0 : i32
    %c0_i32_2 = arith.constant 0 : i32
    %c0_i32_3 = arith.constant 0 : i32
    return %c0_i32, %arg0, %c0_i32_0, %c0_i32_1, %c0_i32_2 : i32, i32, i32, i32, i32
  }
}

</mosaic_0001>

<bundles_post_ra>
// kernel: tpu_custom_call.1
= control target key start
LH: loop header
LB: loop body
LE: loop exit
PB: predicated region body
PF: predicated region fallthrough
CT: control target
= control target key end

     0   :  { %s2237_s24 = smov [#allocation3]   ;;  %s3897_s0 = inlined_call_operand.hbm [shape: s32[6], index: 0, kind: input, shape index: {}]   ;;  %s3898_s1 = inlined_call_operand.hbm [shape: f32[2,6,1,16,16], index: 1, kind: input, shape index: {}]   ;;  %s3899_s2 = inlined_call_operand.hbm [shape: f32[2,6,2,16,16], index: 2, kind: input, shape index: {}]   ;;  %s3900_s3 = inlined_call_operand.hbm [shape: f32[2,6,1,16,16], index: 3, kind: input, shape index: {}]   ;;  %s3901_s4 = inlined_call_operand.hbm [shape: f32[2,6,1,16,16], index: 4, kind: output, shape index: {0}]   ;;  %s3902_s5 = inlined_call_operand.hbm [shape: f32[2,6,2,16,16], index: 5, kind: output, shape index: {1}]   ;;  %s3903_s6 = inlined_call_operand.hbm [shape: f32[2,6,1,16,16], index: 6, kind: output, shape index: {2}]  }
   0x1   :  { %3916 = sst [smem:[#allocation54_spill]] %s3901_s4  ;;  %s13_s23 = sshll.u32 %s3897_s0, 4  ;;  %s14_s23 = int_to_ptr.hbm [resolvable:$true] %s13_s23 }
   0x2   :  { %3917 = sst [smem:[#allocation55_spill]] %s3902_s5 }
   0x3   :  { %3918 = sst [smem:[#allocation56_spill]] %s3903_s6 }
   0x4   :  { %16 = dma.hbm_to_smem %s14_s23, 16, %s2237_s24, [#allocation2] }
   0x5   :  { %2163 = dma.done.wait [#allocation2], 16 }
   0x6   :  { %2164 = vsyncadd [#allocation2], 4294967280 }
   0x7   :  { %19 = sfence }
   0x8   :  { %20 = vsyncpa [#allocation5], 0 }
   0x9   :  { %22 = vsyncpa [#allocation5 + $0x1], 0 }
   0xa   :  { %23 = vsyncpa [#allocation8], 0 }
   0xb   :  { %25 = vsyncpa [#allocation8 + $0x1], 0 }
   0xc   :  { %26 = vsyncpa [#allocation6], 0 }
   0xd   :  { %28 = vsyncpa [#allocation6 + $0x1], 0 }
   0xe   :  { %29 = vsyncpa [#allocation12], 0 }
   0xf   :  { %31 = vsyncpa [#allocation12 + $0x1], 0  ;;  %s2331_s25 = smov 0   ;;  %s2333_s26 = smov 0  }
  0x10   :  { %s2335_s27 = smov 0   ;;  %s2337_s0 = smov 0  }
  0x11   :  { %s2339_s28 = smov 0   ;;  %s2341_s29 = smov 0  }
  0x12   :  { %s2343_s30 = smov 0   ;;  %s2345_s7 = smov 0  }
  0x13   :  { %s2347_s8 = smov 0   ;;  %s2349_s9 = smov 0  }
  0x14   :  { %s2351_s10 = smov 0   ;;  %s2353_s11 = smov 0  }
  0x15   :  { %s2355_s12 = smov 0  }
  0x16 LB: > { %3919 = sst [smem:[#allocation38_spill]] %s2187_s25  ;;  %s2393_s13 = sadd.s32 4294967295, %s2235_s12   ;;  %s2235_s12 = sphi %s2355_s12, %s3960_s12   ;;  %s2231_s11 = sphi %s2353_s11, %s3967_s11   ;;  %s2227_s10 = sphi %s2351_s10, %s3976_s10   ;;  %s2223_s9 = sphi %s2349_s9, %s3975_s9   ;;  %s2219_s8 = sphi %s2347_s8, %s3974_s8   ;;  %s2215_s7 = sphi %s2345_s7, %s3973_s7   ;;  %s2211_s30 = sphi %s2343_s30, %s3972_s30   ;;  %s2207_s29 = sphi %s2341_s29, %s3971_s29   ;;  %s2203_s28 = sphi %s2339_s28, %s3970_s28   ;;  %s2199_s0 = sphi %s2337_s0, %s3969_s0   ;;  %s2195_s27 = sphi %s2335_s27, %s3963_s27   ;;  %s2191_s26 = sphi %s2333_s26, %s3962_s26   ;;  %s2187_s25 = sphi %s2331_s25, %s3961_s25  }
  0x17   : > { %3920 = sst [smem:[#allocation39_spill]] %s2191_s26  ;;  %s2397_s15 = sadd.s32 1, %s2235_s12  }
  0x18   : > { %3921 = sst [smem:[#allocation40_spill]] %s2195_s27  ;;  %s46_s18 = sadd.s32 1, %s2231_s11 }
  0x19   : > { %3922 = sst [smem:[#allocation41_spill]] %s2231_s11  ;;  %p53_p0 = scmp.ne.s32.totalorder %s2231_s11, %s2227_s10 }
  0x1a   : > { %3923 = sst [smem:[#allocation42_spill]] %s2397_s15  ;;  %p54_p1 = scmp.eq.s32.totalorder %s2235_s12, 0 }
  0x1b   : > { %s41_s16 = sld [smem:[#allocation3 + %s2235_s12]]  ;;  %p59_p2 = scmp.ne.s32.totalorder %s2227_s10, %s2223_s9 }
  0x1c   : > { %s42_s17 = sld [smem:[#allocation3 + %s2397_s15]]  ;;  %p60_p3 = scmp.eq.s32.totalorder %s2393_s13, 0 }
  0x1d   : > { %p2409_p4 = por %p54_p1, %p53_p0  ;;  %s69_s20 = sld [smem:[#allocation3 + %s2235_s12]] }
  0x1e   : > { %p2416_p5 = por %p60_p3, %p59_p2  ;;  %s70_s22 = sld [smem:[#allocation3 + %s2397_s15]] }
  0x1f   : > { %s74_s23 = sadd.s32 1, %s2219_s8  ;;  %p81_p6 = scmp.ne.s32.totalorder %s2219_s8, %s2215_s7 }
  0x20   : > { %p87_p7 = scmp.ne.s32.totalorder %s2215_s7, %s2211_s30  ;;  %s97_s6 = sld [smem:[#allocation3 + %s2235_s12]] }
  0x21   : > { %p2427_p9 = por %p81_p6, %p54_p1  ;;  %s98_s30 = sld [smem:[#allocation3 + %s2397_s15]] }
  0x22   : > { %s43_s24 = ssub.s32 %s41_s16, %s42_s17  ;;  %p2433_p10 = por %p87_p7, %p60_p3 }
  0x23   : > { %p44_p8 = scmp.eq.s32.totalorder %s43_s24, 0  ;;  %s102_s17 = sadd.s32 1, %s2207_s29 }
  0x24   : > { %s3927_s14 = scalar_select %p2433_p10, 1, 0 }
  0x25   : > { %s2439_s5 = scalar_select %p44_p8, %s2231_s11, %s46_s18  }
  0x26   : > { %s71_s16 = ssub.s32 %s69_s20, %s70_s22  ;;  %p109_p12 = scmp.ne.s32.totalorder %s2207_s29, %s2203_s28 }
  0x27   : > { %3928 = sst [smem:[#allocation43_spill]] %s2439_s5  ;;  %p72_p11 = scmp.eq.s32.totalorder %s71_s16, 0 }
  0x28   : > { %p115_p13 = scmp.ne.s32.totalorder %s2203_s28, %s2199_s0  ;;  %p2452_p0 = por %p109_p12, %p54_p1 }
  0x29   : > { %s2448_s24 = scalar_select %p72_p11, %s2219_s8, %s74_s23  }
  0x2a   : > { %p2458_p2 = por %p115_p13, %p60_p3  ;;  %s125_s20 = ssub.s32 %s2235_s12, %s2397_s15 }
  0x2b   : > { %3929 = sst [smem:[#allocation44_spill]] %s2448_s24  ;;  %s128_s22 = sadd.s32 1, %s2195_s27 }
  0x2c   : > { %s3931_s18 = scalar_select %p2458_p2, 1, 0 }
  0x2d   : > { %s99_s16 = ssub.s32 %s97_s6, %s98_s30  ;;  %p126_p6 = scmp.eq.s32.totalorder %s125_s20, 0 }
  0x2e   : > { %3932 = sst [smem:[#allocation45_spill]] %s3931_s18  ;;  %p100_p7 = scmp.eq.s32.totalorder %s99_s16, 0 }
  0x2f   : > { %p138_p8 = scmp.ne.s32.totalorder %s2195_s27, %s2191_s26  ;;  %p139_p11 = scmp.eq.s32.totalorder %s2393_s13, 5 }
  0x30   : > { %s2468_s5 = scalar_select %p126_p6, %s2195_s27, %s128_s22  }
  0x31   : > { %s2471_s0 = scalar_select %p100_p7, %s2207_s29, %s102_s17  }
  0x32   : > { %3933 = sst [smem:[#allocation46_spill]] %s2468_s5  ;;  %p144_p1 = scmp.ne.s32.totalorder %s2191_s26, %s2187_s25 }
  0x33   : > { %3934 = sst [smem:[#allocation47_spill]] %s2471_s0  ;;  %s3935_s23 = sadd.s32 4294967294, %s2235_s12  }
  0x34   : > { %p145_p12 = scmp.eq.s32.totalorder %s3935_s23, 5  ;;  %p2478_p10 = por %p139_p11, %p138_p8 }
  0x35   : > { %p1827_p13 = scmp.ge.s32.totalorder %s2235_s12, 6 }
  0x36   : > { %s3936_s24 = scalar_select %p2478_p10, 1, 0 }
  0x37   : > { %p2482_p3 = por %p145_p12, %p144_p1  ;;  %213 = sbr.rel (%p1827_p13) target bundleno = 109 (0x6d), region = 16 }
  0x38   : > { %3937 = sst [smem:[#allocation48_spill]] %s3936_s24 }
  0x39   : > { %s3938_s18 = scalar_select %p2482_p3, 1, 0 }
  0x3b   : > { %3939 = sst [smem:[#allocation49_spill]] %s3938_s18 }
  0x3c   : > { %s217_s6 = sand.u32 1, %s2231_s11   ;;  %s2238_s17 = smov 1536  }
  0x3d   : > { %s1828_s30 = sshll.u32 %s217_s6, 5  ;;  %1874 = sst [smem:[#allocation15]] (%p2409_p4), %s2238_s17 }
  0x3e   : > { %s1871_s20 = scalar_select %p2409_p4, [#allocation3], [#allocation26] }
  0x3f   : > { %s1872_s22 = scalar_select %p2409_p4, %s2235_s12, 0 }
  0x40   : > { %s1873_s16 = scalar_select %p2409_p4, [#allocation0], [#allocation27] }
  0x41   : > { %s222_s23 = sld [smem:[%s1871_s20 + %s1872_s22]]  ;;  %s221_s0 = scalar_lea.vmem [#allocation4], %s1828_s30 }
  0x42   : > { %s242_s5 = sshll.u32 %s221_s0, 4  ;;  %s232_s27 = sld [smem:[%s1873_s16]]   ;;  %s243_s5 = int_to_ptr.vmem [resolvable:$true] %s242_s5 }
  0x43   : > { %s2239_s15 = smov 256   ;;  %s2240_s11 = smov 2  }
  0x44   : > { %1875 = sst [smem:[#allocation15 + $0x1]] (%p2409_p4), %s2239_s15  ;;  %s2241_s17 = smov 128  }
  0x45   : > { %1876 = sst [smem:[#allocation15 + $0x2]] (%p2409_p4), %s2240_s11  ;;  %s2242_s24 = smov 8  }
  0x46   : > { %1877 = sst [smem:[#allocation15 + $0x3]] (%p2409_p4), %s2241_s17  ;;  %s218_s15 = scalar_lea.sflag [#allocation5], %s217_s6 }
  0x47   : > { %s1865_s18 = sshll.u32 %s222_s23, 4  ;;  %1878 = sst [smem:[#allocation15 + $0x4]] (%p2409_p4), %s2241_s17 }
  0x48   : > { %s227_s0 = scalar_lea.hbm %s3898_s1, %s1865_s18  ;;  %s1831_s30 = sshll.u32 %s232_s27, 26 }
  0x49   : > { %s1832_s22 = sadd.s32 134217728, %s1831_s30  ;;  %s240_s16 = sshll.u32 %s227_s0, 4  ;;  %s241_s16 = int_to_ptr.hbm [resolvable:$true] %s240_s16 }
  0x4a   : > { %1879 = sst [smem:[#allocation15 + $0x5]] (%p2409_p4), %s2242_s24  ;;  %s2243_s26 = smov [#allocation14]  }
  0x4b   : > { %1880 = dma.general (%p2409_p4), %s241_s16, 512, %s243_s5, %s218_s15, %s2243_s26, [#allocation15], %s1832_s22, 0  }
  0x4c   : > { %s265_s25 = sand.u32 1, %s2235_s12   ;;  %s267_s27 = sand.u32 1, %s2219_s8  }
  0x4d   : > { %s1833_s11 = sshll.u32 %s267_s27, 6  ;;  %s2244_s17 = smov 3072  }
  0x4e   : > { %s1881_s18 = scalar_select %p2427_p9, [#allocation3], [#allocation28] }
  0x4f   : > { %s1882_s24 = scalar_select %p2427_p9, %s2235_s12, 0 }
  0x50   : > { %s1883_s5 = scalar_select %p2427_p9, [#allocation0], [#allocation29] }
  0x51   : > { %s270_s26 = sld [smem:[%s1881_s18 + %s1882_s24]]  ;;  %s269_s19 = scalar_lea.vmem [#allocation7], %s1833_s11 }
  0x52   : > { %s290_s6 = sshll.u32 %s269_s19, 4  ;;  %s280_s23 = sld [smem:[%s1883_s5]]   ;;  %s291_s6 = int_to_ptr.vmem [resolvable:$true] %s290_s6 }
  0x53   : > { %1884 = sst [smem:[#allocation17]] (%p2427_p9), %s2244_s17  ;;  %s2245_s20 = smov 512  }
  0x54   : > { %1885 = sst [smem:[#allocation17 + $0x1]] (%p2427_p9), %s2245_s20  ;;  %s2246_s0 = smov 4  }
  0x55   : > { %1886 = sst [smem:[#allocation17 + $0x2]] (%p2427_p9), %s2246_s0  ;;  %s2247_s30 = smov 128  }
  0x56   : > { %1887 = sst [smem:[#allocation17 + $0x3]] (%p2427_p9), %s2247_s30  ;;  %s2248_s5 = smov 8  }
  0x57   : > { %s1866_s22 = sshll.u32 %s270_s26, 5  ;;  %1888 = sst [smem:[#allocation17 + $0x4]] (%p2427_p9), %s2247_s30 }
  0x58   : > { %s275_s27 = scalar_lea.hbm %s3899_s2, %s1866_s22  ;;  %s1836_s11 = sshll.u32 %s280_s23, 26 }
  0x59   : > { %s1837_s18 = sadd.s32 134217728, %s1836_s11  ;;  %s288_s24 = sshll.u32 %s275_s27, 4  ;;  %s289_s24 = int_to_ptr.hbm [resolvable:$true] %s288_s24 }
  0x5a   : > { %1889 = sst [smem:[#allocation17 + $0x5]] (%p2427_p9), %s2248_s5  ;;  %s2536_s19 = scalar_lea.sflag [#allocation8], %s265_s25 }
  0x5b   : > { %s2249_s17 = smov [#allocation16]  }
  0x5c   : > { %1890 = dma.general (%p2427_p9), %s289_s24, 1024, %s291_s6, %s2536_s19, %s2249_s17, [#allocation17], %s1837_s18, 0  }
  0x5d   : > { %s315_s26 = sand.u32 1, %s2207_s29   ;;  %s2250_s20 = smov 1536  }
  0x5e   : > { %s1838_s23 = sshll.u32 %s315_s26, 5  ;;  %1894 = sst [smem:[#allocation19]] (%p2452_p0), %s2250_s20 }
  0x5f   : > { %s1891_s25 = scalar_select %p2452_p0, [#allocation3], [#allocation30] }
  0x60   : > { %s1892_s9 = scalar_select %p2452_p0, %s2235_s12, 0 }
  0x61   : > { %s1893_s6 = scalar_select %p2452_p0, [#allocation0], [#allocation31] }
  0x62   : > { %s318_s0 = sld [smem:[%s1891_s25 + %s1892_s9]]  ;;  %s317_s30 = scalar_lea.vmem [#allocation9], %s1838_s23 }
  0x63   : > { %s338_s22 = sshll.u32 %s317_s30, 4  ;;  %s328_s16 = sld [smem:[%s1893_s6]]   ;;  %s339_s22 = int_to_ptr.vmem [resolvable:$true] %s338_s22 }
  0x64   : > { %s2251_s15 = smov 256   ;;  %s2252_s27 = smov 2  }
  0x65   : > { %1895 = sst [smem:[#allocation19 + $0x1]] (%p2452_p0), %s2251_s15  ;;  %s2253_s11 = smov 128  }
  0x66   : > { %1896 = sst [smem:[#allocation19 + $0x2]] (%p2452_p0), %s2252_s27  ;;  %s2254_s24 = smov 8  }
  0x67   : > { %1897 = sst [smem:[#allocation19 + $0x3]] (%p2452_p0), %s2253_s11  ;;  %s2255_s9 = smov [#allocation18]  }
  0x68   : > { %1898 = sst [smem:[#allocation19 + $0x4]] (%p2452_p0), %s2253_s11  ;;  %s1867_s18 = sshll.u32 %s318_s0, 4 }
  0x69   : > { %1899 = sst [smem:[#allocation19 + $0x5]] (%p2452_p0), %s2254_s24  ;;  %s323_s26 = scalar_lea.hbm %s3900_s3, %s1867_s18 }
  0x6a   : > { %s1841_s23 = sshll.u32 %s328_s16, 26  ;;  %s336_s25 = sshll.u32 %s323_s26, 4  ;;  %s337_s25 = int_to_ptr.hbm [resolvable:$true] %s336_s25 }
  0x6b   : > { %s1842_s20 = sadd.s32 134217728, %s1841_s23 }
  0x6c   : > { %1900 = dma.general (%p2452_p0), %s337_s25, 512, %s339_s22, %s2536_s19, %s2255_s9, [#allocation19], %s1842_s20, 0  }
  0x6d PF: > { %p1843_p4 = scmp.ge.s32.totalorder %s2235_s12, 1  ;;  %p359_p9 = scmp.lt.s32.totalorder %s2235_s12, 7 }
  0x6f   : > { %p360_p6 = pnand %p1843_p4, %p359_p9 }
  0x71   : > { %363 = sbr.rel (%p360_p6) target bundleno = 959 (0x3bf), region = 32 }
  0x76   : > { %s365_s6 = sand.u32 1, %s2227_s10  }
  0x77   : > { %s1844_s0 = sshll.u32 %s365_s6, 5  ;;  %s366_s30 = scalar_lea.sflag [#allocation5], %s365_s6 }
  0x78   : > { %s369_s15 = scalar_lea.vmem [#allocation4], %s1844_s0 }
  0x79   : > { %2166 = dma.done.wait (%p2416_p5), %s366_s30, 512  }
  0x7a   : > { %2168 = vsyncadd (%p2416_p5), %s366_s30, 4294966784  ;;  %s375_s4 = sand.u32 1, %s2393_s13   ;;  %s377_s19 = sand.u32 1, %s2215_s7  }
  0x7b   : > { %s1845_s22 = sshll.u32 %s377_s19, 6  ;;  %s376_s16 = scalar_lea.sflag [#allocation8], %s375_s4 }
  0x7c   : > { %s2578_s27 = scalar_lea.vmem [#allocation7], %s1845_s22  ;;  %p3940_p0 = scmp.ne.s32.totalorder %s3927_s14, 0 }
  0x7e   : > { %2170 = dma.done.wait (%p3940_p0), %s376_s16, 1024  }
  0x7f   : > { %2172 = vsyncadd (%p3940_p0), %s376_s16, 4294966272  ;;  %s387_s21 = sand.u32 1, %s2203_s28  }
  0x80   : > { %s1846_s18 = sshll.u32 %s387_s21, 5 }
  0x81   : > { %s2585_s24 = scalar_lea.vmem [#allocation9], %s1846_s18 }
  0x82   : > { %2174 = dma.done.wait (%p2458_p2), %s376_s16, 512  }
  0x83   : > { %2176 = vsyncadd (%p2458_p2), %s376_s16, 4294966784  ;;  %v2591_v0 = vld [vmem:[%s369_s15 + $0x10] sm:$0xff]  ;;  %v2593_v1 = vld [vmem:[%s369_s15] sm:$0xff]  ;;  %s2256_s5 = smov 113   ;;  %s2257_s14 = smov 115   ;;  %vm640_vm0 = vcmask 7168  }
  0x84   : > { %452 = vrot.lane.b32.xlu1 %v2591_v0, %s2256_s5  ;;  %448 = vrot.lane.b32.xlu0 %v2593_v1, %s2256_s5  ;;  %v2601_v2 = vld [vmem:[%s369_s15 + $0x18] sm:$0xff]  ;;  %v2603_v3 = vld [vmem:[%s369_s15 + $0x8] sm:$0xff]  ;;  %s2258_s17 = smov 117   ;;  %s2259_s26 = smov 119   ;;  %vm645_vm1 = vcmask 15360   ;;  %vm650_vm2 = vcmask 23552  }
  0x85   : > { %460 = vrot.lane.b32.xlu2 %v2593_v1, %s2257_s14  ;;  %s2260_s23 = smov 121   ;;  %s2261_s20 = smov 123   ;;  %v2777_v28 = vld [vmem:[%s2578_s27] sm:$0xff]  ;;  %v2780_v29 = vld [vmem:[%s2578_s27 + $0x8] sm:$0xff]  ;;  %v2795_v33 = vld [vmem:[%s2578_s27 + $0x18] sm:$0xff]  ;;  %vm655_vm3 = vcmask 31744  }
  0x86   : > { %s2262_s25 = smov 125   ;;  %s2263_s9 = smov 127   ;;  %v2798_v34 = vld [vmem:[%s2578_s27 + $0x10] sm:$0xff]  ;;  %v2801_v35 = vld [vmem:[%s2578_s27 + $0x20] sm:$0xff]  ;;  %v2819_v40 = vld [vmem:[%s2578_s27 + $0x28] sm:$0xff]  ;;  %vm660_vm4 = vcmask 39936  }
  0x87   : > { %s2264_s6 = smov 1   ;;  %s2265_s0 = smov 3   ;;  %v2816_v39 = vld [vmem:[%s2578_s27 + $0x30] sm:$0xff]  ;;  %v2822_v41 = vld [vmem:[%s2578_s27 + $0x38] sm:$0xff]  ;;  %vm665_vm5 = vcmask 48128   ;;  %vm670_vm6 = vcmask 56320  }
  0x88   : > { %s2266_s30 = smov 5   ;;  %s2267_s15 = smov 7   ;;  %vm675_vm7 = vcmask 64512   ;;  %vm680_vm8 = vcmask 72704   ;;  %vm685_vm9 = vcmask 80896   ;;  %vm690_vm10 = vcmask 89088  }
  0x89   : > { %s3942_s19 = sld [smem:[#allocation39_spill]]  ;;  %s2268_s22 = smov 9   ;;  %vm695_vm11 = vcmask 97280   ;;  %vm700_vm12 = vcmask 105472   ;;  %vm710_vm13 = vcmask 121856   ;;  %vm705_vm14 = vcmask 113664  }
  0x8a   : > { %s2269_s16 = smov 11   ;;  %s2270_s21 = smov 13   ;;  %vm715_vm15 = vcmask 130048  }
  0x8b   : > { %s2271_s18 = smov 15  }
  0x8c   : > { %454 = vrot.lane.b32.xlu1 %v2601_v2, %s2256_s5  ;;  %450 = vrot.lane.b32.xlu0 %v2603_v3, %s2256_s5 }
  0x8d   : > { %462 = vrot.lane.b32.xlu2 %v2603_v3, %s2257_s14 }
  0x8f   : > { %s2736_s11 = sand.u32 1, %s3942_s19  }
  0x90   : > { %s1847_s27 = sshll.u32 %s2736_s11, 5 }
  0x91   : > { %s3034_s19 = scalar_lea.vmem [#allocation10], %s1847_s27 }
  0x94   : > { %466 = vrot.lane.b32.xlu1 %v2601_v2, %s2257_s14  ;;  %464 = vrot.lane.b32.xlu0 %v2591_v0, %s2257_s14 }
  0x95   : > { %472 = vrot.lane.b32.xlu2 %v2593_v1, %s2258_s17 }
  0x9c   : > { %476 = vrot.lane.b32.xlu1 %v2591_v0, %s2258_s17  ;;  %474 = vrot.lane.b32.xlu0 %v2603_v3, %s2258_s17 }
  0x9d   : > { %478 = vrot.lane.b32.xlu2 %v2601_v2, %s2258_s17 }
  0xa4   : > { %486 = vrot.lane.b32.xlu1 %v2603_v3, %s2259_s26  ;;  %484 = vrot.lane.b32.xlu0 %v2593_v1, %s2259_s26 }
  0xa5   : > { %488 = vrot.lane.b32.xlu2 %v2591_v0, %s2259_s26 }
  0xac   : > { %496 = vrot.lane.b32.xlu1 %v2593_v1, %s2260_s23  ;;  %490 = vrot.lane.b32.xlu0 %v2601_v2, %s2259_s26 }
  0xad   : > { %498 = vrot.lane.b32.xlu2 %v2603_v3, %s2260_s23 }
  0xb4   : > { %502 = vrot.lane.b32.xlu1 %v2601_v2, %s2260_s23  ;;  %500 = vrot.lane.b32.xlu0 %v2591_v0, %s2260_s23 }
  0xb5   : > { %508 = vrot.lane.b32.xlu2 %v2593_v1, %s2261_s20 }
  0xbc   : > { %512 = vrot.lane.b32.xlu1 %v2591_v0, %s2261_s20  ;;  %510 = vrot.lane.b32.xlu0 %v2603_v3, %s2261_s20 }
  0xbd   : > { %514 = vrot.lane.b32.xlu2 %v2601_v2, %s2261_s20 }
  0xc4   : > { %522 = vrot.lane.b32.xlu1 %v2603_v3, %s2262_s25  ;;  %520 = vrot.lane.b32.xlu0 %v2593_v1, %s2262_s25 }
  0xc5   : > { %524 = vrot.lane.b32.xlu2 %v2591_v0, %s2262_s25 }
  0xcc   : > { %532 = vrot.lane.b32.xlu1 %v2593_v1, %s2263_s9  ;;  %526 = vrot.lane.b32.xlu0 %v2601_v2, %s2262_s25 }
  0xcd   : > { %534 = vrot.lane.b32.xlu2 %v2603_v3, %s2263_s9 }
  0xd4   : > { %538 = vrot.lane.b32.xlu1 %v2601_v2, %s2263_s9  ;;  %536 = vrot.lane.b32.xlu0 %v2591_v0, %s2263_s9 }
  0xd5   : > { %544 = vrot.lane.b32.xlu2 %v2593_v1, %s2264_s6 }
  0xdc   : > { %548 = vrot.lane.b32.xlu1 %v2591_v0, %s2264_s6  ;;  %546 = vrot.lane.b32.xlu0 %v2603_v3, %s2264_s6 }
  0xdd   : > { %550 = vrot.lane.b32.xlu2 %v2601_v2, %s2264_s6 }
  0xdf   : > { %v2671_v4 = vpop.permute.xlu2 %460 }
  0xe4   : > { %558 = vrot.lane.b32.xlu1 %v2603_v3, %s2265_s0  ;;  %556 = vrot.lane.b32.xlu0 %v2593_v1, %s2265_s0 }
  0xe5   : > { %560 = vrot.lane.b32.xlu2 %v2591_v0, %s2265_s0 }
  0xe7   : > { %v2679_v5 = vpop.permute.xlu2 %462 }
  0xec   : > { %568 = vrot.lane.b32.xlu1 %v2593_v1, %s2266_s30  ;;  %562 = vrot.lane.b32.xlu0 %v2601_v2, %s2265_s0 }
  0xed   : > { %570 = vrot.lane.b32.xlu2 %v2603_v3, %s2266_s30 }
  0xef   : > { %v2687_v6 = vpop.permute.xlu2 %472 }
  0xf4   : > { %574 = vrot.lane.b32.xlu1 %v2601_v2, %s2266_s30  ;;  %572 = vrot.lane.b32.xlu0 %v2591_v0, %s2266_s30 }
  0xf5   : > { %580 = vrot.lane.b32.xlu2 %v2593_v1, %s2267_s15 }
  0xf6   : > { %v2695_v7 = vpop.permute.xlu1 %452  ;;  %v2697_v8 = vpop.permute.xlu0 %448 }
  0xf7   : > { %v2699_v9 = vpop.permute.xlu2 %478 }
  0xfc   : > { %584 = vrot.lane.b32.xlu1 %v2591_v0, %s2267_s15  ;;  %582 = vrot.lane.b32.xlu0 %v2603_v3, %s2267_s15 }
  0xfd   : > { %586 = vrot.lane.b32.xlu2 %v2601_v2, %s2267_s15 }
  0xfe   : > { %v2707_v10 = vpop.permute.xlu1 %454  ;;  %v2709_v11 = vpop.permute.xlu0 %450 }
  0xff   : > { %v2711_v12 = vpop.permute.xlu2 %488 }
 0x104   : > { %594 = vrot.lane.b32.xlu1 %v2603_v3, %s2268_s22  ;;  %592 = vrot.lane.b32.xlu0 %v2593_v1, %s2268_s22 }
 0x105   : > { %596 = vrot.lane.b32.xlu2 %v2591_v0, %s2268_s22 }
 0x106   : > { %v2719_v13 = vpop.permute.xlu1 %466  ;;  %v2721_v14 = vpop.permute.xlu0 %464 }
 0x107   : > { %v2723_v15 = vpop.permute.xlu2 %498 }
 0x10c   : > { %604 = vrot.lane.b32.xlu1 %v2593_v1, %s2269_s16  ;;  %598 = vrot.lane.b32.xlu0 %v2601_v2, %s2268_s22 }
 0x10d   : > { %606 = vrot.lane.b32.xlu2 %v2603_v3, %s2269_s16 }
 0x10e   : > { %v2731_v16 = vpop.permute.xlu1 %476  ;;  %v2733_v17 = vpop.permute.xlu0 %474 }
 0x10f   : > { %v2738_v18 = vpop.permute.xlu2 %508 }
 0x114   : > { %610 = vrot.lane.b32.xlu1 %v2601_v2, %s2269_s16  ;;  %608 = vrot.lane.b32.xlu0 %v2591_v0, %s2269_s16 }
 0x115   : > { %616 = vrot.lane.b32.xlu2 %v2593_v1, %s2270_s21 }
 0x116   : > { %v2746_v19 = vpop.permute.xlu1 %486  ;;  %v2748_v20 = vpop.permute.xlu0 %484 }
 0x117   : > { %v2750_v21 = vpop.permute.xlu2 %514 }
 0x11c   : > { %620 = vrot.lane.b32.xlu1 %v2591_v0, %s2270_s21  ;;  %618 = vrot.lane.b32.xlu0 %v2603_v3, %s2270_s21 }
 0x11d   : > { %622 = vrot.lane.b32.xlu2 %v2601_v2, %s2270_s21 }
 0x11e   : > { %v2758_v22 = vpop.permute.xlu1 %496  ;;  %v2760_v23 = vpop.permute.xlu0 %490 }
 0x11f   : > { %v2762_v24 = vpop.permute.xlu2 %524 }
 0x124   : > { %630 = vrot.lane.b32.xlu1 %v2603_v3, %s2271_s18  ;;  %628 = vrot.lane.b32.xlu0 %v2593_v1, %s2271_s18 }
 0x125   : > { %632 = vrot.lane.b32.xlu2 %v2591_v0, %s2271_s18 }
 0x126   : > { %v2770_v25 = vpop.permute.xlu1 %502  ;;  %v2772_v26 = vpop.permute.xlu0 %500 }
 0x127   : > { %v2774_v27 = vpop.permute.xlu2 %534 }
 0x12c   : > { %736 = vrot.lane.b32.xlu1 %v2777_v28, %s2256_s5  ;;  %634 = vrot.lane.b32.xlu0 %v2601_v2, %s2271_s18  ;;  %v643_v2 = vsel %vm640_vm0, %v2695_v7, %v2721_v14  ;;  %v641_v14 = vsel %vm640_vm0, %v2697_v8, %v2671_v4 }
 0x12d   : > { %738 = vrot.lane.b32.xlu2 %v2780_v29, %s2256_s5  ;;  %v648_v3 = vsel %vm645_vm1, %v643_v2, %v2731_v16  ;;  %v646_v4 = vsel %vm645_vm1, %v641_v14, %v2687_v6 }
 0x12e   : > { %v2788_v30 = vpop.permute.xlu1 %512  ;;  %v2790_v31 = vpop.permute.xlu0 %510  ;;  %v651_v8 = vsel %vm650_vm2, %v646_v4, %v2748_v20 }
 0x12f   : > { %v2792_v32 = vpop.permute.xlu2 %544 }
 0x134   : > { %742 = vrot.lane.b32.xlu1 %v2795_v33, %s2256_s5  ;;  %740 = vrot.lane.b32.xlu0 %v2798_v34, %s2256_s5 }
 0x135   : > { %744 = vrot.lane.b32.xlu2 %v2801_v35, %s2256_s5 }
 0x136   : > { %v2809_v36 = vpop.permute.xlu1 %522  ;;  %v2811_v37 = vpop.permute.xlu0 %520 }
 0x137   : > { %v2813_v38 = vpop.permute.xlu2 %550 }
 0x13c   : > { %748 = vrot.lane.b32.xlu1 %v2816_v39, %s2256_s5  ;;  %746 = vrot.lane.b32.xlu0 %v2819_v40, %s2256_s5 }
 0x13d   : > { %750 = vrot.lane.b32.xlu2 %v2822_v41, %s2256_s5 }
 0x13e   : > { %v2830_v42 = vpop.permute.xlu1 %532  ;;  %v2832_v43 = vpop.permute.xlu0 %526 }
 0x13f   : > { %v2834_v44 = vpop.permute.xlu2 %560 }
 0x144   : > { %762 = vrot.lane.b32.xlu1 %v2780_v29, %s2257_s14  ;;  %760 = vrot.lane.b32.xlu0 %v2777_v28, %s2257_s14 }
 0x145   : > { %764 = vrot.lane.b32.xlu2 %v2798_v34, %s2257_s14 }
 0x146   : > { %v2842_v45 = vpop.permute.xlu1 %538  ;;  %v2844_v46 = vpop.permute.xlu0 %536 }
 0x147   : > { %v2846_v47 = vpop.permute.xlu2 %570 }
 0x14c   : > { %768 = vrot.lane.b32.xlu1 %v2801_v35, %s2257_s14  ;;  %766 = vrot.lane.b32.xlu0 %v2795_v33, %s2257_s14 }
 0x14d   : > { %770 = vrot.lane.b32.xlu2 %v2819_v40, %s2257_s14 }
 0x14e   : > { %v2854_v48 = vpop.permute.xlu1 %548  ;;  %v2856_v49 = vpop.permute.xlu0 %546 }
 0x14f   : > { %v2858_v50 = vpop.permute.xlu2 %580 }
 0x154   : > { %774 = vrot.lane.b32.xlu1 %v2822_v41, %s2257_s14  ;;  %772 = vrot.lane.b32.xlu0 %v2816_v39, %s2257_s14 }
 0x155   : > { %784 = vrot.lane.b32.xlu2 %v2777_v28, %s2258_s17 }
 0x156   : > { %v2866_v51 = vpop.permute.xlu1 %558  ;;  %v2868_v52 = vpop.permute.xlu0 %556 }
 0x157   : > { %v2870_v53 = vpop.permute.xlu2 %586 }
 0x158   : > { %3943 = vst [vmem:[#allocation50_spill] sm:$0xff] %v2870_v53 }
 0x15c   : > { %788 = vrot.lane.b32.xlu1 %v2798_v34, %s2258_s17  ;;  %786 = vrot.lane.b32.xlu0 %v2780_v29, %s2258_s17 }
 0x15d   : > { %790 = vrot.lane.b32.xlu2 %v2795_v33, %s2258_s17 }
 0x15e   : > { %v2878_v54 = vpop.permute.xlu1 %568  ;;  %v2880_v55 = vpop.permute.xlu0 %562 }
 0x15f   : > { %v2882_v56 = vpop.permute.xlu2 %596 }
 0x164   : > { %794 = vrot.lane.b32.xlu1 %v2819_v40, %s2258_s17  ;;  %792 = vrot.lane.b32.xlu0 %v2801_v35, %s2258_s17 }
 0x165   : > { %796 = vrot.lane.b32.xlu2 %v2816_v39, %s2258_s17 }
 0x166   : > { %v2890_v57 = vpop.permute.xlu1 %574  ;;  %v573_v58 = vpop.permute.xlu0 %572 }
 0x167   : > { %v2892_v59 = vpop.permute.xlu2 %606 }
 0x16c   : > { %808 = vrot.lane.b32.xlu1 %v2777_v28, %s2259_s26  ;;  %798 = vrot.lane.b32.xlu0 %v2822_v41, %s2258_s17 }
 0x16d   : > { %810 = vrot.lane.b32.xlu2 %v2780_v29, %s2259_s26 }
 0x16e   : > { %v585_v60 = vpop.permute.xlu1 %584  ;;  %v2900_v61 = vpop.permute.xlu0 %582 }
 0x16f   : > { %v2902_v62 = vpop.permute.xlu2 %616 }
 0x170   : > { %3944 = vst [vmem:[#allocation51_spill] sm:$0xff] %v2902_v62  ;;  %v642_v62 = vsel %vm640_vm0, %v2709_v11, %v2679_v5  ;;  %v656_v11 = vsel %vm655_vm3, %v651_v8, %v2758_v22 }
 0x174   : > { %814 = vrot.lane.b32.xlu1 %v2795_v33, %s2259_s26  ;;  %812 = vrot.lane.b32.xlu0 %v2798_v34, %s2259_s26 }
 0x175   : > { %816 = vrot.lane.b32.xlu2 %v2801_v35, %s2259_s26 }
 0x176   : > { %v2910_v63 = vpop.permute.xlu1 %594  ;;  %v2912_v0 = vpop.permute.xlu0 %592 }
 0x177   : > { %v2914_v1 = vpop.permute.xlu2 %622 }
 0x178   : > { %3945 = vst [vmem:[#allocation52_spill] sm:$0xff] %v2914_v1  ;;  %v653_v1 = vsel %vm650_vm2, %v648_v3, %v2711_v12  ;;  %v647_v3 = vsel %vm645_vm1, %v642_v62, %v2733_v17 }
 0x179   : > { %v658_v16 = vsel %vm655_vm3, %v653_v1, %v2772_v26 }
 0x17a   : > { %v663_v12 = vsel %vm660_vm4, %v658_v16, %v2788_v30  ;;  %v661_v30 = vsel %vm660_vm4, %v656_v11, %v2738_v18 }
 0x17b   : > { %v668_v5 = vsel %vm665_vm5, %v663_v12, %v2762_v24  ;;  %v644_v24 = vsel %vm640_vm0, %v2707_v10, %v2719_v13 }
 0x17c   : > { %820 = vrot.lane.b32.xlu1 %v2816_v39, %s2259_s26  ;;  %818 = vrot.lane.b32.xlu0 %v2819_v40, %s2259_s26  ;;  %v673_v26 = vsel %vm670_vm6, %v668_v5, %v2844_v46  ;;  %v649_v13 = vsel %vm645_vm1, %v644_v24, %v2699_v9 }
 0x17d   : > { %822 = vrot.lane.b32.xlu2 %v2822_v41, %s2259_s26  ;;  %v678_v17 = vsel %vm675_vm7, %v673_v26, %v2854_v48  ;;  %v666_v48 = vsel %vm665_vm5, %v661_v30, %v2811_v37  ;;  %v654_v37 = vsel %vm650_vm2, %v649_v13, %v2760_v23 }
 0x17e   : > { %v2929_v53 = vpop.permute.xlu1 %604  ;;  %v2931_v7 = vpop.permute.xlu0 %598  ;;  %v671_v62 = vsel %vm670_vm6, %v666_v48, %v2830_v42  ;;  %v659_v42 = vsel %vm655_vm3, %v654_v37, %v2770_v25 }
 0x17f   : > { %3946 = vst [vmem:[#allocation53_spill] sm:$0xff] %v2931_v7  ;;  %v633_v2 = vpop.permute.xlu2 %632  ;;  %v652_v7 = vsel %vm650_vm2, %v647_v3, %v2746_v19  ;;  %v676_v9 = vsel %vm675_vm7, %v671_v62, %v2792_v32 }
 0x180   : > { %v657_v6 = vsel %vm655_vm3, %v652_v7, %v2723_v15  ;;  %v681_v23 = vsel %vm680_vm8, %v676_v9, %v2868_v52  ;;  %v664_v52 = vsel %vm660_vm4, %v659_v42, %v2750_v21 }
 0x181   : > { %v662_v19 = vsel %vm660_vm4, %v657_v6, %v2790_v31  ;;  %v683_v31 = vsel %vm680_vm8, %v678_v17, %v2834_v44  ;;  %v686_v25 = vsel %vm685_vm9, %v681_v23, %v2878_v54  ;;  %v669_v1 = vsel %vm665_vm5, %v664_v52, %v2832_v43  ;;  %v3950_v17 = vld [vmem:[#allocation52_spill] sm:$0xff] }
 0x182   : > { %v667_v15 = vsel %vm665_vm5, %v662_v19, %v2809_v36  ;;  %v688_v10 = vsel %vm685_vm9, %v683_v31, %v573_v58  ;;  %v674_v14 = vsel %vm670_vm6, %v669_v1, %v2842_v45  ;;  %v691_v21 = vsel %vm690_vm10, %v686_v25, %v2858_v50 }
 0x183   : > { %v672_v18 = vsel %vm670_vm6, %v667_v15, %v2774_v27  ;;  %v693_v36 = vsel %vm690_vm10, %v688_v10, %v585_v60 }
 0x184   : > { %834 = vrot.lane.b32.xlu1 %v2780_v29, %s2260_s23  ;;  %832 = vrot.lane.b32.xlu0 %v2777_v28, %s2260_s23  ;;  %v677_v44 = vsel %vm675_vm7, %v672_v18, %v2856_v49  ;;  %v698_v27 = vsel %vm695_vm11, %v693_v36, %v2882_v56 }
 0x185   : > { %836 = vrot.lane.b32.xlu2 %v2798_v34, %s2260_s23  ;;  %v682_v58 = vsel %vm680_vm8, %v677_v44, %v2866_v51 }
 0x186   : > { %v2969_v20 = vpop.permute.xlu1 %610  ;;  %v609_v22 = vpop.permute.xlu0 %608  ;;  %v687_v7 = vsel %vm685_vm9, %v682_v58, %v2846_v47  ;;  %v696_v47 = vsel %vm695_vm11, %v691_v21, %v2912_v0 }
 0x187   : > { %v2978_v46 = vpop.permute.xlu2 %738  ;;  %v703_v32 = vsel %vm700_vm12, %v698_v27, %v609_v22  ;;  %v692_v16 = vsel %vm690_vm10, %v687_v7, %v2900_v61  ;;  %v701_v45 = vsel %vm700_vm12, %v696_v47, %v2929_v53  ;;  %v679_v61 = vsel %vm675_vm7, %v674_v14, %v2813_v38 }
 0x188   : > { %v697_v43 = vsel %vm695_vm11, %v692_v16, %v2910_v63  ;;  %v684_v50 = vsel %vm680_vm8, %v679_v61, %v2880_v55 }
 0x189   : > { %v702_v63 = vsel %vm700_vm12, %v697_v43, %v2892_v59  ;;  %v689_v53 = vsel %vm685_vm9, %v684_v50, %v2890_v57  ;;  %v3948_v59 = vld [vmem:[#allocation50_spill] sm:$0xff]  ;;  %v3949_v57 = vld [vmem:[#allocation53_spill] sm:$0xff] }
 0x18a   : > { %v694_v5 = vsel %vm690_vm10, %v689_v53, %v3948_v59 }
 0x18b   : > { %v699_v11 = vsel %vm695_vm11, %v694_v5, %v3949_v57 }
 0x18c   : > { %840 = vrot.lane.b32.xlu1 %v2801_v35, %s2260_s23  ;;  %838 = vrot.lane.b32.xlu0 %v2795_v33, %s2260_s23  ;;  %v704_v26 = vsel %vm700_vm12, %v699_v11, %v2969_v20 }
 0x18d   : > { %842 = vrot.lane.b32.xlu2 %v2819_v40, %s2260_s23  ;;  %v709_v19 = vsel %vm705_vm14, %v704_v26, %v3950_v17 }
 0x18e   : > { %v621_v49 = vpop.permute.xlu1 %620  ;;  %v619_v51 = vpop.permute.xlu0 %618 }
 0x18f   : > { %v708_v60 = vsel %vm705_vm14, %v703_v32, %v621_v49  ;;  %v3019_v56 = vpop.permute.xlu2 %744  ;;  %v707_v38 = vsel %vm705_vm14, %v702_v63, %v619_v51 }
 0x190   : > { %v713_v54 = vsel %vm710_vm13, %v708_v60, %v633_v2  ;;  %v3947_v2 = vld [vmem:[#allocation51_spill] sm:$0xff] }
 0x191   : > { %718 = vst.msk [vmem:[%s3034_s19 + $0x10] sm:$0xff] %vm715_vm15, %v713_v54  ;;  %v706_v12 = vsel %vm705_vm14, %v701_v45, %v3947_v2 }
 0x194   : > { %846 = vrot.lane.b32.xlu1 %v2822_v41, %s2260_s23  ;;  %844 = vrot.lane.b32.xlu0 %v2816_v39, %s2260_s23 }
 0x195   : > { %856 = vrot.lane.b32.xlu2 %v2777_v28, %s2261_s20 }
 0x196   : > { %v631_v0 = vpop.permute.xlu1 %630  ;;  %v629_v3 = vpop.permute.xlu0 %628 }
 0x197   : > { %v712_v4 = vsel %vm710_vm13, %v707_v38, %v631_v0  ;;  %v711_v55 = vsel %vm710_vm13, %v706_v12, %v629_v3  ;;  %v3063_v8 = vpop.permute.xlu2 %750 }
 0x198   : > { %717 = vst.msk [vmem:[%s3034_s19 + $0x8] sm:$0xff] %vm715_vm15, %v712_v4 }
 0x199   : > { %716 = vst.msk [vmem:[%s3034_s19] sm:$0xff] %vm715_vm15, %v711_v55 }
 0x19c   : > { %860 = vrot.lane.b32.xlu1 %v2798_v34, %s2261_s20  ;;  %858 = vrot.lane.b32.xlu0 %v2780_v29, %s2261_s20 }
 0x19d   : > { %862 = vrot.lane.b32.xlu2 %v2795_v33, %s2261_s20 }
 0x19e   : > { %v3081_v6 = vpop.permute.xlu1 %736  ;;  %v635_v22 = vpop.permute.xlu0 %634 }
 0x19f   : > { %v714_v24 = vsel %vm710_vm13, %v709_v19, %v635_v22  ;;  %v3086_v15 = vpop.permute.xlu2 %764 }
 0x1a0   : > { %719 = vst.msk [vmem:[%s3034_s19 + $0x18] sm:$0xff] %vm715_vm15, %v714_v24 }
 0x1a4   : > { %866 = vrot.lane.b32.xlu1 %v2819_v40, %s2261_s20  ;;  %864 = vrot.lane.b32.xlu0 %v2801_v35, %s2261_s20 }
 0x1a5   : > { %868 = vrot.lane.b32.xlu2 %v2816_v39, %s2261_s20 }
 0x1a6   : > { %v3096_v20 = vpop.permute.xlu1 %742  ;;  %v3098_v30 = vpop.permute.xlu0 %740 }
 0x1a7   : > { %v3100_v48 = vpop.permute.xlu2 %770 }
 0x1ac   : > { %880 = vrot.lane.b32.xlu1 %v2777_v28, %s2262_s25  ;;  %870 = vrot.lane.b32.xlu0 %v2822_v41, %s2261_s20 }
 0x1ad   : > { %882 = vrot.lane.b32.xlu2 %v2780_v29, %s2262_s25 }
 0x1ae   : > { %v3108_v31 = vpop.permute.xlu1 %748  ;;  %v3110_v62 = vpop.permute.xlu0 %746 }
 0x1af   : > { %v3112_v10 = vpop.permute.xlu2 %784 }
 0x1b4   : > { %886 = vrot.lane.b32.xlu1 %v2795_v33, %s2262_s25  ;;  %884 = vrot.lane.b32.xlu0 %v2798_v34, %s2262_s25 }
 0x1b5   : > { %888 = vrot.lane.b32.xlu2 %v2801_v35, %s2262_s25 }
 0x1b6   : > { %v3120_v13 = vpop.permute.xlu1 %762  ;;  %v3122_v18 = vpop.permute.xlu0 %760 }
 0x1b7   : > { %v3124_v36 = vpop.permute.xlu2 %790 }
 0x1bc   : > { %892 = vrot.lane.b32.xlu1 %v2816_v39, %s2262_s25  ;;  %890 = vrot.lane.b32.xlu0 %v2819_v40, %s2262_s25 }
 0x1bd   : > { %894 = vrot.lane.b32.xlu2 %v2822_v41, %s2262_s25 }
 0x1be   : > { %v3132_v37 = vpop.permute.xlu1 %768  ;;  %v3134_v44 = vpop.permute.xlu0 %766 }
 0x1bf   : > { %v3136_v42 = vpop.permute.xlu2 %796 }
 0x1c4   : > { %906 = vrot.lane.b32.xlu1 %v2780_v29, %s2263_s9  ;;  %904 = vrot.lane.b32.xlu0 %v2777_v28, %s2263_s9 }
 0x1c5   : > { %908 = vrot.lane.b32.xlu2 %v2798_v34, %s2263_s9 }
 0x1c6   : > { %v3144_v58 = vpop.permute.xlu1 %774  ;;  %v3146_v9 = vpop.permute.xlu0 %772 }
 0x1c7   : > { %v3148_v23 = vpop.permute.xlu2 %810  ;;  %v1127_v11 = vsel %vm640_vm0, %v3063_v8, %v3144_v58  ;;  %v1122_v58 = vsel %vm640_vm0, %v3098_v30, %v3086_v15  ;;  %v1126_v15 = vsel %vm640_vm0, %v3108_v31, %v3146_v9 }
 0x1cc   : > { %912 = vrot.lane.b32.xlu1 %v2801_v35, %s2263_s9  ;;  %910 = vrot.lane.b32.xlu0 %v2795_v33, %s2263_s9 }
 0x1cd   : > { %914 = vrot.lane.b32.xlu2 %v2819_v40, %s2263_s9 }
 0x1ce   : > { %v3156_v27 = vpop.permute.xlu1 %788  ;;  %v3158_v25 = vpop.permute.xlu0 %786 }
 0x1cf   : > { %v3160_v32 = vpop.permute.xlu2 %816 }
 0x1d4   : > { %918 = vrot.lane.b32.xlu1 %v2822_v41, %s2263_s9  ;;  %916 = vrot.lane.b32.xlu0 %v2816_v39, %s2263_s9 }
 0x1d5   : > { %928 = vrot.lane.b32.xlu2 %v2777_v28, %s2264_s6 }
 0x1d6   : > { %v3168_v49 = vpop.permute.xlu1 %794  ;;  %v3170_v51 = vpop.permute.xlu0 %792 }
 0x1d7   : > { %v823_v52 = vpop.permute.xlu2 %822 }
 0x1dc   : > { %932 = vrot.lane.b32.xlu1 %v2798_v34, %s2264_s6  ;;  %930 = vrot.lane.b32.xlu0 %v2780_v29, %s2264_s6 }
 0x1dd   : > { %934 = vrot.lane.b32.xlu2 %v2795_v33, %s2264_s6 }
 0x1de   : > { %v3178_v60 = vpop.permute.xlu1 %808  ;;  %v799_v1 = vpop.permute.xlu0 %798 }
 0x1df   : > { %v837_v7 = vpop.permute.xlu2 %836  ;;  %v1135_v26 = vsel %vm645_vm1, %v1127_v11, %v799_v1 }
 0x1e0   : > { %v1143_v17 = vsel %vm650_vm2, %v1135_v26, %v823_v52  ;;  %v1130_v52 = vsel %vm645_vm1, %v1122_v58, %v3156_v27  ;;  %v1125_v26 = vsel %vm640_vm0, %v3110_v62, %v3100_v48  ;;  %v1121_v48 = vsel %vm640_vm0, %v2978_v46, %v3120_v13 }
 0x1e1   : > { %v1133_v31 = vsel %vm645_vm1, %v1125_v26, %v3168_v49  ;;  %v1120_v62 = vsel %vm640_vm0, %v3081_v6, %v3122_v18  ;;  %v1129_v49 = vsel %vm645_vm1, %v1121_v48, %v3158_v25 }
 0x1e2   : > { %v1128_v18 = vsel %vm645_vm1, %v1120_v62, %v3112_v10  ;;  %v1137_v25 = vsel %vm650_vm2, %v1129_v49, %v3148_v23  ;;  %v1124_v10 = vsel %vm640_vm0, %v3019_v56, %v3132_v37  ;;  %v1123_v23 = vsel %vm640_vm0, %v3096_v20, %v3134_v44 }
 0x1e4   : > { %938 = vrot.lane.b32.xlu1 %v2819_v40, %s2264_s6  ;;  %936 = vrot.lane.b32.xlu0 %v2801_v35, %s2264_s6 }
 0x1e5   : > { %940 = vrot.lane.b32.xlu2 %v2816_v39, %s2264_s6 }
 0x1e6   : > { %v3186_v54 = vpop.permute.xlu1 %814  ;;  %v813_v14 = vpop.permute.xlu0 %812 }
 0x1e7   : > { %v3188_v16 = vpop.permute.xlu2 %842  ;;  %v1138_v11 = vsel %vm650_vm2, %v1130_v52, %v813_v14 }
 0x1ec   : > { %952 = vrot.lane.b32.xlu1 %v2777_v28, %s2265_s0  ;;  %942 = vrot.lane.b32.xlu0 %v2822_v41, %s2264_s6 }
 0x1ed   : > { %954 = vrot.lane.b32.xlu2 %v2780_v29, %s2265_s0 }
 0x1ee   : > { %v3196_v21 = vpop.permute.xlu1 %820  ;;  %v3198_v43 = vpop.permute.xlu0 %818 }
 0x1ef   : > { %v3200_v47 = vpop.permute.xlu2 %856 }
 0x1f4   : > { %958 = vrot.lane.b32.xlu1 %v2795_v33, %s2265_s0  ;;  %956 = vrot.lane.b32.xlu0 %v2798_v34, %s2265_s0 }
 0x1f5   : > { %960 = vrot.lane.b32.xlu2 %v2801_v35, %s2265_s0 }
 0x1f6   : > { %v3208_v45 = vpop.permute.xlu1 %834  ;;  %v3210_v61 = vpop.permute.xlu0 %832 }
 0x1f7   : > { %v3212_v50 = vpop.permute.xlu2 %862 }
 0x1fc   : > { %964 = vrot.lane.b32.xlu1 %v2816_v39, %s2265_s0  ;;  %962 = vrot.lane.b32.xlu0 %v2819_v40, %s2265_s0 }
 0x1fd   : > { %966 = vrot.lane.b32.xlu2 %v2822_v41, %s2265_s0 }
 0x1fe   : > { %v3220_v63 = vpop.permute.xlu1 %840  ;;  %v3222_v53 = vpop.permute.xlu0 %838 }
 0x1ff   : > { %v869_v38 = vpop.permute.xlu2 %868 }
 0x204   : > { %978 = vrot.lane.b32.xlu1 %v2780_v29, %s2266_s30  ;;  %976 = vrot.lane.b32.xlu0 %v2777_v28, %s2266_s30 }
 0x205   : > { %980 = vrot.lane.b32.xlu2 %v2798_v34, %s2266_s30 }
 0x206   : > { %v847_v0 = vpop.permute.xlu1 %846  ;;  %v845_v2 = vpop.permute.xlu0 %844 }
 0x207   : > { %v3230_v12 = vpop.permute.xlu2 %882  ;;  %v1151_v19 = vsel %vm655_vm3, %v1143_v17, %v847_v0  ;;  %v1146_v0 = vsel %vm655_vm3, %v1138_v11, %v837_v7  ;;  %v1134_v17 = vsel %vm645_vm1, %v1126_v15, %v3136_v42 }
 0x208   : > { %v1142_v9 = vsel %vm650_vm2, %v1134_v17, %v3196_v21 }
 0x20c   : > { %984 = vrot.lane.b32.xlu1 %v2801_v35, %s2266_s30  ;;  %982 = vrot.lane.b32.xlu0 %v2795_v33, %s2266_s30 }
 0x20d   : > { %986 = vrot.lane.b32.xlu2 %v2819_v40, %s2266_s30 }
 0x20e   : > { %v861_v3 = vpop.permute.xlu1 %860  ;;  %v859_v4 = vpop.permute.xlu0 %858 }
 0x20f   : > { %v3238_v55 = vpop.permute.xlu2 %888  ;;  %v1154_v30 = vsel %vm660_vm4, %v1146_v0, %v861_v3  ;;  %v1141_v3 = vsel %vm650_vm2, %v1133_v31, %v3198_v43 }
 0x210   : > { %3951 = vst [vmem:[#allocation51_spill] sm:$0xff] %v3238_v55  ;;  %v1149_v42 = vsel %vm655_vm3, %v1141_v3, %v3188_v16 }
 0x214   : > { %990 = vrot.lane.b32.xlu1 %v2822_v41, %s2266_s30  ;;  %988 = vrot.lane.b32.xlu0 %v2816_v39, %s2266_s30 }
 0x215   : > { %1000 = vrot.lane.b32.xlu2 %v2777_v28, %s2267_s15 }
 0x216   : > { %v867_v59 = vpop.permute.xlu1 %866  ;;  %v3246_v5 = vpop.permute.xlu0 %864 }
 0x217   : > { %v895_v57 = vpop.permute.xlu2 %894  ;;  %v1157_v43 = vsel %vm660_vm4, %v1149_v42, %v867_v59  ;;  %v1145_v59 = vsel %vm655_vm3, %v1137_v25, %v3208_v45  ;;  %v1132_v45 = vsel %vm645_vm1, %v1124_v10, %v3170_v51 }
 0x218   : > { %v1153_v58 = vsel %vm660_vm4, %v1145_v59, %v859_v4  ;;  %v1140_v51 = vsel %vm650_vm2, %v1132_v45, %v3160_v32  ;;  %v3952_v32 = vld [vmem:[#allocation51_spill] sm:$0xff] }
 0x21c   : > { %1004 = vrot.lane.b32.xlu1 %v2798_v34, %s2267_s15  ;;  %1002 = vrot.lane.b32.xlu0 %v2780_v29, %s2267_s15 }
 0x21d   : > { %1006 = vrot.lane.b32.xlu2 %v2795_v33, %s2267_s15 }
 0x21e   : > { %v881_v22 = vpop.permute.xlu1 %880  ;;  %v871_v24 = vpop.permute.xlu0 %870 }
 0x21f   : > { %v1159_v55 = vsel %vm660_vm4, %v1151_v19, %v871_v24  ;;  %v909_v8 = vpop.permute.xlu2 %908  ;;  %v1150_v19 = vsel %vm655_vm3, %v1142_v9, %v845_v2 }
 0x220   : > { %v3265_v1 = vsel %vm665_vm5, %v1159_v55, %v895_v57  ;;  %v1158_v21 = vsel %vm660_vm4, %v1150_v19, %v869_v38  ;;  %v1136_v38 = vsel %vm650_vm2, %v1128_v18, %v3178_v60 }
 0x224   : > { %1010 = vrot.lane.b32.xlu1 %v2819_v40, %s2267_s15  ;;  %1008 = vrot.lane.b32.xlu0 %v2801_v35, %s2267_s15 }
 0x225   : > { %1012 = vrot.lane.b32.xlu2 %v2816_v39, %s2267_s15 }
 0x226   : > { %v887_v27 = vpop.permute.xlu1 %886  ;;  %v885_v55 = vpop.permute.xlu0 %884 }
 0x227   : > { %v1162_v14 = vsel %vm665_vm5, %v1154_v30, %v885_v55  ;;  %v915_v57 = vpop.permute.xlu2 %914 }
 0x228   : > { %v3286_v7 = vsel %vm670_vm6, %v1162_v14, %v909_v8  ;;  %v1144_v8 = vsel %vm655_vm3, %v1136_v38, %v3210_v61  ;;  %v1161_v61 = vsel %vm665_vm5, %v1153_v58, %v3230_v12 }
 0x229   : > { %v1152_v60 = vsel %vm660_vm4, %v1144_v8, %v3200_v47  ;;  %v1131_v47 = vsel %vm645_vm1, %v1123_v23, %v3124_v36 }
 0x22a   : > { %v1160_v4 = vsel %vm665_vm5, %v1152_v60, %v881_v22  ;;  %v1139_v12 = vsel %vm650_vm2, %v1131_v47, %v3186_v54  ;;  %v1148_v22 = vsel %vm655_vm3, %v1140_v51, %v3220_v63 }
 0x22b   : > { %v1147_v0 = vsel %vm655_vm3, %v1139_v12, %v3222_v53  ;;  %v1156_v15 = vsel %vm660_vm4, %v1148_v22, %v3246_v5  ;;  %v3463_v22 = vld [vmem:[%s2585_s24 + $0x8] sm:$0xff] }
 0x22c   : > { %1024 = vrot.lane.b32.xlu1 %v2777_v28, %s2268_s22  ;;  %1014 = vrot.lane.b32.xlu0 %v2822_v41, %s2267_s15  ;;  %v1155_v36 = vsel %vm660_vm4, %v1147_v0, %v3212_v50  ;;  %v1164_v54 = vsel %vm665_vm5, %v1156_v15, %v3952_v32 }
 0x22d   : > { %1026 = vrot.lane.b32.xlu2 %v2780_v29, %s2268_s22  ;;  %v1163_v63 = vsel %vm665_vm5, %v1155_v36, %v887_v27 }
 0x22e   : > { %v893_v2 = vpop.permute.xlu1 %892  ;;  %v891_v24 = vpop.permute.xlu0 %890 }
 0x22f   : > { %v1166_v46 = vsel %vm665_vm5, %v1158_v21, %v893_v2  ;;  %v1165_v13 = vsel %vm665_vm5, %v1157_v43, %v891_v24  ;;  %v929_v6 = vpop.permute.xlu2 %928 }
 0x230   : > { %v3320_v16 = vsel %vm670_vm6, %v1165_v13, %v915_v57 }
 0x234   : > { %1030 = vrot.lane.b32.xlu1 %v2795_v33, %s2268_s22  ;;  %1028 = vrot.lane.b32.xlu0 %v2798_v34, %s2268_s22 }
 0x235   : > { %1032 = vrot.lane.b32.xlu2 %v2801_v35, %s2268_s22 }
 0x236   : > { %v907_v52 = vpop.permute.xlu1 %906  ;;  %v905_v56 = vpop.permute.xlu0 %904 }
 0x237   : > { %v1169_v37 = vsel %vm670_vm6, %v1161_v61, %v907_v52  ;;  %v1168_v20 = vsel %vm670_vm6, %v1160_v4, %v905_v56  ;;  %v935_v44 = vpop.permute.xlu2 %934 }
 0x238   : > { %v1176_v11 = vsel %vm675_vm7, %v1168_v20, %v929_v6 }
 0x23c   : > { %1036 = vrot.lane.b32.xlu1 %v2816_v39, %s2268_s22  ;;  %1034 = vrot.lane.b32.xlu0 %v2819_v40, %s2268_s22 }
 0x23d   : > { %1038 = vrot.lane.b32.xlu2 %v2822_v41, %s2268_s22 }
 0x23e   : > { %v913_v53 = vpop.permute.xlu1 %912  ;;  %v911_v30 = vpop.permute.xlu0 %910 }
 0x23f   : > { %v1172_v5 = vsel %vm670_vm6, %v1164_v54, %v913_v53  ;;  %v1171_v55 = vsel %vm670_vm6, %v1163_v63, %v911_v30  ;;  %v941_v14 = vpop.permute.xlu2 %940  ;;  %v3485_v63 = vld [vmem:[%s2585_s24 + $0x18] sm:$0xff] }
 0x240   : > { %v1179_v57 = vsel %vm675_vm7, %v1171_v55, %v935_v44 }
 0x244   : > { %1050 = vrot.lane.b32.xlu1 %v2780_v29, %s2269_s16  ;;  %1048 = vrot.lane.b32.xlu0 %v2777_v28, %s2269_s16 }
 0x245   : > { %1052 = vrot.lane.b32.xlu2 %v2798_v34, %s2269_s16 }
 0x246   : > { %v919_v50 = vpop.permute.xlu1 %918  ;;  %v917_v27 = vpop.permute.xlu0 %916 }
 0x247   : > { %v1175_v26 = vsel %vm670_vm6, %v3265_v1, %v919_v50  ;;  %v1174_v17 = vsel %vm670_vm6, %v1166_v46, %v917_v27  ;;  %v955_v31 = vpop.permute.xlu2 %954 }
 0x248   : > { %v1182_v9 = vsel %vm675_vm7, %v1174_v17, %v941_v14 }
 0x24c   : > { %1056 = vrot.lane.b32.xlu1 %v2801_v35, %s2269_s16  ;;  %1054 = vrot.lane.b32.xlu0 %v2795_v33, %s2269_s16 }
 0x24d   : > { %1058 = vrot.lane.b32.xlu2 %v2819_v40, %s2269_s16 }
 0x24e   : > { %v933_v3 = vpop.permute.xlu1 %932  ;;  %v931_v19 = vpop.permute.xlu0 %930 }
 0x24f   : > { %v1178_v48 = vsel %vm675_vm7, %v3286_v7, %v933_v3  ;;  %v1177_v1 = vsel %vm675_vm7, %v1169_v37, %v931_v19  ;;  %v961_v62 = vpop.permute.xlu2 %960 }
 0x250   : > { %v1185_v42 = vsel %vm680_vm8, %v1177_v1, %v955_v31 }
 0x254   : > { %1062 = vrot.lane.b32.xlu1 %v2822_v41, %s2269_s16  ;;  %1060 = vrot.lane.b32.xlu0 %v2816_v39, %s2269_s16 }
 0x255   : > { %1072 = vrot.lane.b32.xlu2 %v2777_v28, %s2270_s21 }
 0x256   : > { %v939_v49 = vpop.permute.xlu1 %938  ;;  %v937_v21 = vpop.permute.xlu0 %936 }
 0x257   : > { %v1181_v43 = vsel %vm675_vm7, %v3320_v16, %v939_v49  ;;  %v1180_v7 = vsel %vm675_vm7, %v1172_v5, %v937_v21  ;;  %v967_v2 = vpop.permute.xlu2 %966 }
 0x258   : > { %v1188_v24 = vsel %vm680_vm8, %v1180_v7, %v961_v62 }
 0x25c   : > { %1076 = vrot.lane.b32.xlu1 %v2798_v34, %s2270_s21  ;;  %1074 = vrot.lane.b32.xlu0 %v2780_v29, %s2270_s21 }
 0x25d   : > { %1078 = vrot.lane.b32.xlu2 %v2795_v33, %s2270_s21 }
 0x25e   : > { %v953_v46 = vpop.permute.xlu1 %952  ;;  %v943_v13 = vpop.permute.xlu0 %942 }
 0x25f   : > { %v1184_v6 = vsel %vm680_vm8, %v1176_v11, %v953_v46  ;;  %v1183_v18 = vsel %vm675_vm7, %v1175_v26, %v943_v13  ;;  %v981_v16 = vpop.permute.xlu2 %980 }
 0x260   : > { %v1191_v25 = vsel %vm680_vm8, %v1183_v18, %v967_v2 }
 0x264   : > { %1082 = vrot.lane.b32.xlu1 %v2819_v40, %s2270_s21  ;;  %1080 = vrot.lane.b32.xlu0 %v2801_v35, %s2270_s21 }
 0x265   : > { %1084 = vrot.lane.b32.xlu2 %v2816_v39, %s2270_s21 }
 0x266   : > { %v959_v38 = vpop.permute.xlu1 %958  ;;  %v957_v59 = vpop.permute.xlu0 %956 }
 0x267   : > { %v1187_v8 = vsel %vm680_vm8, %v1179_v57, %v959_v38  ;;  %v1186_v58 = vsel %vm680_vm8, %v1178_v48, %v957_v59  ;;  %v987_v10 = vpop.permute.xlu2 %986 }
 0x268   : > { %v1194_v23 = vsel %vm685_vm9, %v1186_v58, %v981_v16 }
 0x26c   : > { %1096 = vrot.lane.b32.xlu1 %v2777_v28, %s2271_s18  ;;  %1086 = vrot.lane.b32.xlu0 %v2822_v41, %s2270_s21 }
 0x26d   : > { %1098 = vrot.lane.b32.xlu2 %v2780_v29, %s2271_s18 }
 0x26e   : > { %v965_v60 = vpop.permute.xlu1 %964  ;;  %v963_v45 = vpop.permute.xlu0 %962 }
 0x26f   : > { %v1190_v61 = vsel %vm680_vm8, %v1182_v9, %v965_v60  ;;  %v1189_v4 = vsel %vm680_vm8, %v1181_v43, %v963_v45  ;;  %v1001_v52 = vpop.permute.xlu2 %1000 }
 0x270   : > { %v1197_v56 = vsel %vm685_vm9, %v1189_v4, %v987_v10 }
 0x274   : > { %1102 = vrot.lane.b32.xlu1 %v2795_v33, %s2271_s18  ;;  %1100 = vrot.lane.b32.xlu0 %v2798_v34, %s2271_s18 }
 0x275   : > { %1104 = vrot.lane.b32.xlu2 %v2801_v35, %s2271_s18 }
 0x276   : > { %v979_v28 = vpop.permute.xlu1 %978  ;;  %v977_v29 = vpop.permute.xlu0 %976 }
 0x277   : > { %v3443_v37 = vsel %vm685_vm9, %v1185_v42, %v979_v28  ;;  %v1192_v20 = vsel %vm685_vm9, %v1184_v6, %v977_v29  ;;  %v1007_v44 = vpop.permute.xlu2 %1006 }
 0x278   : > { %v3447_v47 = vsel %vm690_vm10, %v1192_v20, %v1001_v52 }
 0x27c   : > { %1108 = vrot.lane.b32.xlu1 %v2816_v39, %s2271_s18  ;;  %1106 = vrot.lane.b32.xlu0 %v2819_v40, %s2271_s18  ;;  %v3466_v39 = vld [vmem:[%s2585_s24] sm:$0xff]  ;;  %v3469_v40 = vld [vmem:[%s2585_s24 + $0x10] sm:$0xff]  ;;  %s1848_s24 = sshll.u32 %s2736_s11, 6 }
 0x27d   : > { %1110 = vrot.lane.b32.xlu2 %v2822_v41, %s2271_s18 }
 0x27e   : > { %v985_v33 = vpop.permute.xlu1 %984  ;;  %v983_v34 = vpop.permute.xlu0 %982 }
 0x27f   : > { %v3456_v35 = vsel %vm685_vm9, %v1188_v24, %v985_v33  ;;  %v1195_v11 = vsel %vm685_vm9, %v1187_v8, %v983_v34  ;;  %v1013_v51 = vpop.permute.xlu2 %1012 }
 0x280   : > { %v3460_v12 = vsel %vm690_vm10, %v1195_v11, %v1007_v44 }
 0x284   : > { %1263 = vrot.lane.b32.xlu1 %v3463_v22, %s2256_s5  ;;  %1261 = vrot.lane.b32.xlu0 %v3466_v39, %s2256_s5 }
 0x285   : > { %1265 = vrot.lane.b32.xlu2 %v3469_v40, %s2256_s5 }
 0x286   : > { %v991_v41 = vpop.permute.xlu1 %990  ;;  %v989_v0 = vpop.permute.xlu0 %988 }
 0x287   : > { %v3478_v15 = vsel %vm685_vm9, %v1191_v25, %v991_v41  ;;  %v1198_v36 = vsel %vm685_vm9, %v1190_v61, %v989_v0  ;;  %v1027_v32 = vpop.permute.xlu2 %1026 }
 0x288   : > { %v3482_v54 = vsel %vm690_vm10, %v1198_v36, %v1013_v51 }
 0x28c   : > { %1273 = vrot.lane.b32.xlu1 %v3466_v39, %s2257_s14  ;;  %1267 = vrot.lane.b32.xlu0 %v3485_v63, %s2256_s5  ;;  %s3578_s5 = scalar_lea.vmem [#allocation11], %s1848_s24 }
 0x28d   : > { %1275 = vrot.lane.b32.xlu2 %v3463_v22, %s2257_s14 }
 0x28e   : > { %v1005_v53 = vpop.permute.xlu1 %1004  ;;  %v1003_v30 = vpop.permute.xlu0 %1002 }
 0x28f   : > { %v3494_v5 = vsel %vm690_vm10, %v1194_v23, %v1005_v53  ;;  %v3496_v55 = vpop.permute.xlu2 %1032  ;;  %v1201_v6 = vsel %vm690_vm10, %v3443_v37, %v1003_v30 }
 0x290   : > { %v1209_v18 = vsel %vm695_vm11, %v1201_v6, %v1027_v32 }
 0x294   : > { %1279 = vrot.lane.b32.xlu1 %v3485_v63, %s2257_s14  ;;  %1277 = vrot.lane.b32.xlu0 %v3469_v40, %s2257_s14  ;;  %s3757_s14 = scalar_lea.vmem [#allocation13], %s1847_s27 }
 0x295   : > { %1285 = vrot.lane.b32.xlu2 %v3466_v39, %s2258_s17 }
 0x296   : > { %v1011_v14 = vpop.permute.xlu1 %1010  ;;  %v1009_v57 = vpop.permute.xlu0 %1008 }
 0x297   : > { %v3505_v50 = vsel %vm690_vm10, %v1197_v56, %v1011_v14  ;;  %v3507_v27 = vpop.permute.xlu2 %1038  ;;  %v1204_v23 = vsel %vm690_vm10, %v3456_v35, %v1009_v57 }
 0x298   : > { %v1212_v60 = vsel %vm695_vm11, %v1204_v23, %v3496_v55 }
 0x29c   : > { %1289 = vrot.lane.b32.xlu1 %v3469_v40, %s2258_s17  ;;  %1287 = vrot.lane.b32.xlu0 %v3463_v22, %s2258_s17 }
 0x29d   : > { %1291 = vrot.lane.b32.xlu2 %v3485_v63, %s2258_s17  ;;  %s1518_s17 = scalar_lea.sflag [#allocation6], %s2736_s11 }
 0x29e   : > { %v1025_v26 = vpop.permute.xlu1 %1024  ;;  %v1015_v17 = vpop.permute.xlu0 %1014 }
 0x29f   : > { %v3515_v31 = vpop.permute.xlu2 %1052  ;;  %v1208_v37 = vsel %vm695_vm11, %v3447_v47, %v1025_v26  ;;  %v1207_v20 = vsel %vm690_vm10, %v3478_v15, %v1015_v17 }
 0x2a0   : > { %v1215_v33 = vsel %vm695_vm11, %v1207_v20, %v3507_v27 }
 0x2a4   : > { %1299 = vrot.lane.b32.xlu1 %v3463_v22, %s2259_s26  ;;  %1297 = vrot.lane.b32.xlu0 %v3466_v39, %s2259_s26 }
 0x2a5   : > { %1301 = vrot.lane.b32.xlu2 %v3469_v40, %s2259_s26 }
 0x2a6   : > { %v3523_v9 = vpop.permute.xlu1 %1030  ;;  %v3525_v3 = vpop.permute.xlu0 %1028 }
 0x2a7   : > { %v3527_v19 = vpop.permute.xlu2 %1058  ;;  %v1211_v32 = vsel %vm695_vm11, %v3460_v12, %v3523_v9  ;;  %v1210_v53 = vsel %vm695_vm11, %v3494_v5, %v3525_v3 }
 0x2a8   : > { %v1218_v55 = vsel %vm700_vm12, %v1210_v53, %v3515_v31 }
 0x2ac   : > { %1309 = vrot.lane.b32.xlu1 %v3466_v39, %s2260_s23  ;;  %1303 = vrot.lane.b32.xlu0 %v3485_v63, %s2259_s26  ;;  %s3785_s26 = scalar_lea.sflag [#allocation12], %s375_s4 }
 0x2ad   : > { %1311 = vrot.lane.b32.xlu2 %v3463_v22, %s2260_s23 }
 0x2ae   : > { %v3535_v48 = vpop.permute.xlu1 %1036  ;;  %v3537_v1 = vpop.permute.xlu0 %1034 }
 0x2af   : > { %v1073_v62 = vpop.permute.xlu2 %1072  ;;  %v1214_v31 = vsel %vm695_vm11, %v3482_v54, %v3535_v48  ;;  %v1213_v9 = vsel %vm695_vm11, %v3505_v50, %v3537_v1 }
 0x2b4   : > { %1315 = vrot.lane.b32.xlu1 %v3485_v63, %s2260_s23  ;;  %1313 = vrot.lane.b32.xlu0 %v3469_v40, %s2260_s23 }
 0x2b5   : > { %1321 = vrot.lane.b32.xlu2 %v3466_v39, %s2261_s20 }
 0x2b6   : > { %v1051_v42 = vpop.permute.xlu1 %1050  ;;  %v1049_v49 = vpop.permute.xlu0 %1048 }
 0x2b7   : > { %v3545_v21 = vpop.permute.xlu2 %1078  ;;  %v1217_v16 = vsel %vm700_vm12, %v1209_v18, %v1051_v42  ;;  %v1216_v44 = vsel %vm700_vm12, %v1208_v37, %v1049_v49 }
 0x2b8   : > { %v1224_v47 = vsel %vm705_vm14, %v1216_v44, %v1073_v62  ;;  %v1221_v62 = vsel %vm700_vm12, %v1213_v9, %v3527_v19 }
 0x2bc   : > { %1325 = vrot.lane.b32.xlu1 %v3469_v40, %s2261_s20  ;;  %1323 = vrot.lane.b32.xlu0 %v3463_v22, %s2261_s20 }
 0x2bd   : > { %1327 = vrot.lane.b32.xlu2 %v3485_v63, %s2261_s20 }
 0x2be   : > { %v1057_v43 = vpop.permute.xlu1 %1056  ;;  %v1055_v7 = vpop.permute.xlu0 %1054 }
 0x2bf   : > { %v3553_v2 = vpop.permute.xlu2 %1084  ;;  %v1220_v45 = vsel %vm700_vm12, %v1212_v60, %v1057_v43  ;;  %v1219_v30 = vsel %vm700_vm12, %v1211_v32, %v1055_v7 }
 0x2c0   : > { %v1227_v12 = vsel %vm705_vm14, %v1219_v30, %v3545_v21 }
 0x2c4   : > { %1335 = vrot.lane.b32.xlu1 %v3463_v22, %s2262_s25  ;;  %1333 = vrot.lane.b32.xlu0 %v3466_v39, %s2262_s25 }
 0x2c5   : > { %1337 = vrot.lane.b32.xlu2 %v3469_v40, %s2262_s25 }
 0x2c6   : > { %v1063_v24 = vpop.permute.xlu1 %1062  ;;  %v3561_v46 = vpop.permute.xlu0 %1060 }
 0x2c7   : > { %v1099_v13 = vpop.permute.xlu2 %1098  ;;  %v1223_v34 = vsel %vm700_vm12, %v1215_v33, %v1063_v24  ;;  %v1222_v3 = vsel %vm700_vm12, %v1214_v31, %v3561_v46 }
 0x2c8   : > { %v1230_v54 = vsel %vm705_vm14, %v1222_v3, %v3553_v2 }
 0x2cc   : > { %1345 = vrot.lane.b32.xlu1 %v3466_v39, %s2263_s9  ;;  %1339 = vrot.lane.b32.xlu0 %v3485_v63, %s2262_s25 }
 0x2cd   : > { %1347 = vrot.lane.b32.xlu2 %v3463_v22, %s2263_s9 }
 0x2ce   : > { %v1077_v25 = vpop.permute.xlu1 %1076  ;;  %v1075_v38 = vpop.permute.xlu0 %1074 }
 0x2cf   : > { %v1225_v59 = vsel %vm705_vm14, %v1217_v16, %v1075_v38  ;;  %v1105_v8 = vpop.permute.xlu2 %1104  ;;  %v1226_v5 = vsel %vm705_vm14, %v1218_v55, %v1077_v25 }
 0x2d0   : > { %v1233_v58 = vsel %vm710_vm13, %v1225_v59, %v1099_v13 }
 0x2d1   : > { %v1241_v10 = vsub.f32 0.0, %v1233_v58 }
 0x2d3   : > { %1245 = vst.msk [vmem:[%s3578_s5 + $0x8] sm:$0xff] %vm715_vm15, %v1241_v10 }
 0x2d4   : > { %1351 = vrot.lane.b32.xlu1 %v3485_v63, %s2263_s9  ;;  %1349 = vrot.lane.b32.xlu0 %v3469_v40, %s2263_s9 }
 0x2d5   : > { %1357 = vrot.lane.b32.xlu2 %v3466_v39, %s2264_s6 }
 0x2d6   : > { %v1083_v61 = vpop.permute.xlu1 %1082  ;;  %v1081_v4 = vpop.permute.xlu0 %1080 }
 0x2d7   : > { %v1228_v52 = vsel %vm705_vm14, %v1220_v45, %v1081_v4  ;;  %v1111_v56 = vpop.permute.xlu2 %1110  ;;  %v1229_v50 = vsel %vm705_vm14, %v1221_v62, %v1083_v61 }
 0x2d8   : > { %v1236_v28 = vsel %vm710_vm13, %v1228_v52, %v1105_v8 }
 0x2d9   : > { %v1242_v29 = vsub.f32 0.0, %v1236_v28 }
 0x2db   : > { %1246 = vst.msk [vmem:[%s3578_s5 + $0x20] sm:$0xff] %vm715_vm15, %v1242_v29 }
 0x2dc   : > { %1361 = vrot.lane.b32.xlu1 %v3469_v40, %s2264_s6  ;;  %1359 = vrot.lane.b32.xlu0 %v3463_v22, %s2264_s6 }
 0x2dd   : > { %1363 = vrot.lane.b32.xlu2 %v3485_v63, %s2264_s6 }
 0x2de   : > { %v1097_v35 = vpop.permute.xlu1 %1096  ;;  %v1087_v11 = vpop.permute.xlu0 %1086 }
 0x2df   : > { %v1232_v51 = vsel %vm710_vm13, %v1224_v47, %v1097_v35  ;;  %v1231_v41 = vsel %vm705_vm14, %v1223_v34, %v1087_v11  ;;  %v1266_v0 = vpop.permute.xlu2 %1265 }
 0x2e0   : > { %v1240_v15 = vsub.f32 0.0, %v1232_v51  ;;  %v1239_v36 = vsel %vm710_vm13, %v1231_v41, %v1111_v56 }
 0x2e1   : > { %1853 = vst.msk [vmem:[%s3578_s5 + $0x38] sm:$0xff] %vm715_vm15, %v1239_v36 }
 0x2e2   : > { %1244 = vst.msk [vmem:[%s3578_s5] sm:$0xff] %vm715_vm15, %v1240_v15 }
 0x2e4   : > { %1371 = vrot.lane.b32.xlu1 %v3463_v22, %s2265_s0  ;;  %1369 = vrot.lane.b32.xlu0 %v3466_v39, %s2265_s0 }
 0x2e5   : > { %1373 = vrot.lane.b32.xlu2 %v3469_v40, %s2265_s0 }
 0x2e6   : > { %v1103_v14 = vpop.permute.xlu1 %1102  ;;  %v1101_v57 = vpop.permute.xlu0 %1100 }
 0x2e7   : > { %v1235_v27 = vsel %vm710_vm13, %v1227_v12, %v1103_v14  ;;  %v1234_v26 = vsel %vm710_vm13, %v1226_v5, %v1101_v57  ;;  %v1276_v17 = vpop.permute.xlu2 %1275 }
 0x2e8   : > { %1851 = vst.msk [vmem:[%s3578_s5 + $0x18] sm:$0xff] %vm715_vm15, %v1235_v27 }
 0x2e9   : > { %1850 = vst.msk [vmem:[%s3578_s5 + $0x10] sm:$0xff] %vm715_vm15, %v1234_v26 }
 0x2ec   : > { %1381 = vrot.lane.b32.xlu1 %v3466_v39, %s2266_s30  ;;  %1375 = vrot.lane.b32.xlu0 %v3485_v63, %s2265_s0 }
 0x2ed   : > { %1383 = vrot.lane.b32.xlu2 %v3463_v22, %s2266_s30 }
 0x2ee   : > { %v1109_v48 = vpop.permute.xlu1 %1108  ;;  %v1107_v1 = vpop.permute.xlu0 %1106 }
 0x2ef   : > { %v1238_v42 = vsel %vm710_vm13, %v1230_v54, %v1109_v48  ;;  %v1237_v49 = vsel %vm710_vm13, %v1229_v50, %v1107_v1  ;;  %v1286_v21 = vpop.permute.xlu2 %1285 }
 0x2f0   : > { %1852 = vst.msk [vmem:[%s3578_s5 + $0x30] sm:$0xff] %vm715_vm15, %v1238_v42  ;;  %v1243_v43 = vsub.f32 0.0, %v1237_v49 }
 0x2f2   : > { %1247 = vst.msk [vmem:[%s3578_s5 + $0x28] sm:$0xff] %vm715_vm15, %v1243_v43 }
 0x2f4   : > { %1387 = vrot.lane.b32.xlu1 %v3485_v63, %s2266_s30  ;;  %1385 = vrot.lane.b32.xlu0 %v3469_v40, %s2266_s30 }
 0x2f5   : > { %1393 = vrot.lane.b32.xlu2 %v3466_v39, %s2267_s15 }
 0x2f6   : > { %v1264_v19 = vpop.permute.xlu1 %1263  ;;  %v1262_v7 = vpop.permute.xlu0 %1261 }
 0x2f7   : > { %v1454_v2 = vsel %vm640_vm0, %v1264_v19, %v1276_v17  ;;  %v1292_v24 = vpop.permute.xlu2 %1291 }
 0x2fc   : > { %1397 = vrot.lane.b32.xlu1 %v3469_v40, %s2267_s15  ;;  %1395 = vrot.lane.b32.xlu0 %v3463_v22, %s2267_s15 }
 0x2fd   : > { %1399 = vrot.lane.b32.xlu2 %v3485_v63, %s2267_s15 }
 0x2fe   : > { %v1274_v46 = vpop.permute.xlu1 %1273  ;;  %v1268_v13 = vpop.permute.xlu0 %1267 }
 0x2ff   : > { %v1453_v6 = vsel %vm640_vm0, %v1262_v7, %v1274_v46  ;;  %v1302_v18 = vpop.permute.xlu2 %1301 }
 0x300   : > { %v1457_v16 = vsel %vm645_vm1, %v1453_v6, %v1286_v21 }
 0x304   : > { %1407 = vrot.lane.b32.xlu1 %v3463_v22, %s2268_s22  ;;  %1405 = vrot.lane.b32.xlu0 %v3466_v39, %s2268_s22 }
 0x305   : > { %1409 = vrot.lane.b32.xlu2 %v3469_v40, %s2268_s22 }
 0x306   : > { %v1280_v25 = vpop.permute.xlu1 %1279  ;;  %v1278_v38 = vpop.permute.xlu0 %1277 }
 0x307   : > { %v1456_v59 = vsel %vm640_vm0, %v1268_v13, %v1280_v25  ;;  %v1455_v8 = vsel %vm640_vm0, %v1266_v0, %v1278_v38  ;;  %v1312_v58 = vpop.permute.xlu2 %1311 }
 0x308   : > { %v1460_v10 = vsel %vm645_vm1, %v1456_v59, %v1292_v24 }
 0x30c   : > { %1417 = vrot.lane.b32.xlu1 %v3466_v39, %s2269_s16  ;;  %1411 = vrot.lane.b32.xlu0 %v3485_v63, %s2268_s22 }
 0x30d   : > { %1419 = vrot.lane.b32.xlu2 %v3463_v22, %s2269_s16 }
 0x30e   : > { %v1290_v23 = vpop.permute.xlu1 %1289  ;;  %v1288_v60 = vpop.permute.xlu0 %1287 }
 0x30f   : > { %v1459_v45 = vsel %vm645_vm1, %v1455_v8, %v1290_v23  ;;  %v1458_v61 = vsel %vm645_vm1, %v1454_v2, %v1288_v60  ;;  %v1322_v4 = vpop.permute.xlu2 %1321 }
 0x310   : > { %v1463_v52 = vsel %vm650_vm2, %v1459_v45, %v1302_v18 }
 0x314   : > { %1423 = vrot.lane.b32.xlu1 %v3485_v63, %s2269_s16  ;;  %1421 = vrot.lane.b32.xlu0 %v3469_v40, %s2269_s16 }
 0x315   : > { %1429 = vrot.lane.b32.xlu2 %v3466_v39, %s2270_s21 }
 0x316   : > { %v1300_v56 = vpop.permute.xlu1 %1299  ;;  %v1298_v28 = vpop.permute.xlu0 %1297 }
 0x317   : > { %v1462_v29 = vsel %vm650_vm2, %v1458_v61, %v1300_v56  ;;  %v1461_v37 = vsel %vm650_vm2, %v1457_v16, %v1298_v28  ;;  %v1328_v20 = vpop.permute.xlu2 %1327 }
 0x318   : > { %v1466_v44 = vsel %vm655_vm3, %v1462_v29, %v1312_v58 }
 0x31c   : > { %1433 = vrot.lane.b32.xlu1 %v3469_v40, %s2270_s21  ;;  %1431 = vrot.lane.b32.xlu0 %v3463_v22, %s2270_s21 }
 0x31d   : > { %1435 = vrot.lane.b32.xlu2 %v3485_v63, %s2270_s21 }
 0x31e   : > { %v1310_v33 = vpop.permute.xlu1 %1309  ;;  %v1304_v47 = vpop.permute.xlu0 %1303 }
 0x31f   : > { %v1465_v34 = vsel %vm655_vm3, %v1461_v37, %v1310_v33  ;;  %v1464_v35 = vsel %vm650_vm2, %v1460_v10, %v1304_v47  ;;  %v1338_v11 = vpop.permute.xlu2 %1337 }
 0x320   : > { %v1469_v51 = vsel %vm660_vm4, %v1465_v34, %v1322_v4 }
 0x324   : > { %1443 = vrot.lane.b32.xlu1 %v3463_v22, %s2271_s18  ;;  %1441 = vrot.lane.b32.xlu0 %v3466_v39, %s2271_s18 }
 0x325   : > { %1445 = vrot.lane.b32.xlu2 %v3469_v40, %s2271_s18 }
 0x326   : > { %v1316_v41 = vpop.permute.xlu1 %1315  ;;  %v1314_v0 = vpop.permute.xlu0 %1313 }
 0x327   : > { %v1468_v15 = vsel %vm655_vm3, %v1464_v35, %v1316_v41  ;;  %v1467_v36 = vsel %vm655_vm3, %v1463_v52, %v1314_v0  ;;  %v1348_v32 = vpop.permute.xlu2 %1347 }
 0x328   : > { %v1472_v53 = vsel %vm660_vm4, %v1468_v15, %v1328_v20 }
 0x32c   : > { %1447 = vrot.lane.b32.xlu0 %v3485_v63, %s2271_s18 }
 0x32e   : > { %v1326_v30 = vpop.permute.xlu1 %1325  ;;  %v1324_v22 = vpop.permute.xlu0 %1323 }
 0x32f   : > { %v1471_v55 = vsel %vm660_vm4, %v1467_v36, %v1326_v30  ;;  %v1470_v39 = vsel %vm660_vm4, %v1466_v44, %v1324_v22  ;;  %v1358_v12 = vpop.permute.xlu2 %1357 }
 0x330   : > { %v1475_v40 = vsel %vm665_vm5, %v1471_v55, %v1338_v11 }
 0x336   : > { %v1336_v5 = vpop.permute.xlu1 %1335  ;;  %v1334_v14 = vpop.permute.xlu0 %1333 }
 0x337   : > { %v1474_v57 = vsel %vm665_vm5, %v1470_v39, %v1336_v5  ;;  %v1473_v27 = vsel %vm665_vm5, %v1469_v51, %v1334_v14  ;;  %v1364_v26 = vpop.permute.xlu2 %1363 }
 0x338   : > { %v1478_v17 = vsel %vm670_vm6, %v1474_v57, %v1348_v32 }
 0x33e   : > { %v1346_v31 = vpop.permute.xlu1 %1345  ;;  %v1340_v63 = vpop.permute.xlu0 %1339 }
 0x33f   : > { %v1477_v9 = vsel %vm670_vm6, %v1473_v27, %v1346_v31  ;;  %v1476_v3 = vsel %vm665_vm5, %v1472_v53, %v1340_v63  ;;  %v1374_v62 = vpop.permute.xlu2 %1373 }
 0x340   : > { %v1481_v54 = vsel %vm675_vm7, %v1477_v9, %v1358_v12 }
 0x346   : > { %v1352_v50 = vpop.permute.xlu1 %1351  ;;  %v1350_v48 = vpop.permute.xlu0 %1349 }
 0x347   : > { %v1480_v1 = vsel %vm670_vm6, %v1476_v3, %v1352_v50  ;;  %v1479_v42 = vsel %vm670_vm6, %v1475_v40, %v1350_v48  ;;  %v1384_v49 = vpop.permute.xlu2 %1383 }
 0x348   : > { %v1484_v21 = vsel %vm675_vm7, %v1480_v1, %v1364_v26 }
 0x34e   : > { %v1362_v43 = vpop.permute.xlu1 %1361  ;;  %v1360_v19 = vpop.permute.xlu0 %1359 }
 0x34f   : > { %v1482_v7 = vsel %vm675_vm7, %v1478_v17, %v1360_v19  ;;  %v1394_v2 = vpop.permute.xlu2 %1393  ;;  %v1483_v52 = vsel %vm675_vm7, %v1479_v42, %v1362_v43 }
 0x350   : > { %v1487_v29 = vsel %vm680_vm8, %v1483_v52, %v1374_v62 }
 0x356   : > { %v1372_v24 = vpop.permute.xlu1 %1371  ;;  %v1370_v46 = vpop.permute.xlu0 %1369 }
 0x357   : > { %v1400_v13 = vpop.permute.xlu2 %1399  ;;  %v1486_v44 = vsel %vm680_vm8, %v1482_v7, %v1372_v24  ;;  %v1485_v33 = vsel %vm680_vm8, %v1481_v54, %v1370_v46 }
 0x358   : > { %v1490_v15 = vsel %vm685_vm9, %v1486_v44, %v1384_v49 }
 0x35e   : > { %v1382_v6 = vpop.permute.xlu1 %1381  ;;  %v1376_v18 = vpop.permute.xlu0 %1375 }
 0x35f   : > { %v1410_v16 = vpop.permute.xlu2 %1409  ;;  %v1489_v35 = vsel %vm685_vm9, %v1485_v33, %v1382_v6  ;;  %v1488_v39 = vsel %vm680_vm8, %v1484_v21, %v1376_v18 }
 0x360   : > { %v1493_v32 = vsel %vm690_vm10, %v1489_v35, %v1394_v2 }
 0x366   : > { %v1388_v25 = vpop.permute.xlu1 %1387  ;;  %v1386_v38 = vpop.permute.xlu0 %1385 }
 0x367   : > { %v1420_v58 = vpop.permute.xlu2 %1419  ;;  %v1491_v37 = vsel %vm685_vm9, %v1487_v29, %v1386_v38  ;;  %v1492_v40 = vsel %vm685_vm9, %v1488_v39, %v1388_v25 }
 0x368   : > { %v1496_v31 = vsel %vm690_vm10, %v1492_v40, %v1400_v13 }
 0x36e   : > { %v1398_v59 = vpop.permute.xlu1 %1397  ;;  %v1396_v8 = vpop.permute.xlu0 %1395 }
 0x36f   : > { %v1430_v60 = vpop.permute.xlu2 %1429  ;;  %v1495_v20 = vsel %vm690_vm10, %v1491_v37, %v1398_v59  ;;  %v1494_v53 = vsel %vm690_vm10, %v1490_v15, %v1396_v8 }
 0x370   : > { %v1499_v47 = vsel %vm695_vm11, %v1495_v20, %v1410_v16 }
 0x376   : > { %v1408_v10 = vpop.permute.xlu1 %1407  ;;  %v1406_v23 = vpop.permute.xlu0 %1405 }
 0x377   : > { %v1436_v4 = vpop.permute.xlu2 %1435  ;;  %v1498_v30 = vsel %vm695_vm11, %v1494_v53, %v1408_v10  ;;  %v1497_v22 = vsel %vm695_vm11, %v1493_v32, %v1406_v23 }
 0x378   : > { %v1502_v12 = vsel %vm700_vm12, %v1498_v30, %v1420_v58 }
 0x37e   : > { %v1418_v45 = vpop.permute.xlu1 %1417  ;;  %v1412_v61 = vpop.permute.xlu0 %1411 }
 0x37f   : > { %v1446_v34 = vpop.permute.xlu2 %1445  ;;  %v1501_v55 = vsel %vm700_vm12, %v1497_v22, %v1418_v45  ;;  %v1500_v63 = vsel %vm695_vm11, %v1496_v31, %v1412_v61 }
 0x380   : > { %v1505_v5 = vsel %vm705_vm14, %v1501_v55, %v1430_v60 }
 0x386   : > { %v1424_v56 = vpop.permute.xlu1 %1423  ;;  %v1422_v28 = vpop.permute.xlu0 %1421 }
 0x387   : > { %v1503_v11 = vsel %vm700_vm12, %v1499_v47, %v1422_v28  ;;  %v1504_v9 = vsel %vm700_vm12, %v1500_v63, %v1424_v56 }
 0x388   : > { %v1508_v3 = vsel %vm705_vm14, %v1504_v9, %v1436_v4 }
 0x38e   : > { %v1434_v51 = vpop.permute.xlu1 %1433  ;;  %v1432_v41 = vpop.permute.xlu0 %1431 }
 0x38f   : > { %v1507_v0 = vsel %vm705_vm14, %v1503_v11, %v1434_v51  ;;  %v1506_v14 = vsel %vm705_vm14, %v1502_v12, %v1432_v41 }
 0x390   : > { %v1511_v36 = vsel %vm710_vm13, %v1507_v0, %v1446_v34 }
 0x391   : > { %1515 = vst.msk [vmem:[%s3757_s14 + $0x10] sm:$0xff] %vm715_vm15, %v1511_v36 }
 0x396   : > { %v1444_v57 = vpop.permute.xlu1 %1443  ;;  %v1442_v27 = vpop.permute.xlu0 %1441 }
 0x397   : > { %v1510_v26 = vsel %vm710_vm13, %v1506_v14, %v1444_v57  ;;  %v1509_v17 = vsel %vm710_vm13, %v1505_v5, %v1442_v27 }
 0x398   : > { %1514 = vst.msk [vmem:[%s3757_s14 + $0x8] sm:$0xff] %vm715_vm15, %v1510_v26 }
 0x399   : > { %1513 = vst.msk [vmem:[%s3757_s14] sm:$0xff] %vm715_vm15, %v1509_v17 }
 0x39e   : > { %v1448_v62 = vpop.permute.xlu0 %1447 }
 0x39f   : > { %v1512_v54 = vsel %vm710_vm13, %v1508_v3, %v1448_v62 }
 0x3a0   : > { %1516 = vst.msk [vmem:[%s3757_s14 + $0x18] sm:$0xff] %vm715_vm15, %v1512_v54 }
 0x3a1   : > { %s1868_s20 = sshll.u32 %s2393_s13, 4  ;;  %s1550_s25 = sshll.u32 %s3034_s19, 4  ;;  %s1551_s25 = int_to_ptr.vmem [resolvable:$true] %s1550_s25 }
 0x3a2   : > { %s3954_s0 = sld [smem:[#allocation54_spill]]  ;;  %s2272_s15 = smov 256  }
 0x3a3   : > { %1904 = sst [smem:[#allocation21]] (%p2478_p10), %s2272_s15  ;;  %s2273_s22 = smov 1536  }
 0x3a4   : > { %1905 = sst [smem:[#allocation21 + $0x1]] (%p2478_p10), %s2273_s22  ;;  %s2274_s16 = smov 2  }
 0x3a5   : > { %1906 = sst [smem:[#allocation21 + $0x2]] (%p2478_p10), %s2274_s16  ;;  %s2275_s11 = smov 128  }
 0x3a6   : > { %1907 = sst [smem:[#allocation21 + $0x3]] (%p2478_p10), %s2275_s11  ;;  %s2276_s21 = smov 8  }
 0x3a7   : > { %1908 = sst [smem:[#allocation21 + $0x4]] (%p2478_p10), %s2275_s11  ;;  %s2277_s18 = smov [#allocation20]  }
 0x3a8   : > { %s1539_s30 = scalar_lea.hbm %s3954_s0, %s1868_s20  ;;  %1909 = sst [smem:[#allocation21 + $0x5]] (%p2478_p10), %s2276_s21 }
 0x3a9   : > { %s1552_s4 = sshll.u32 %s1539_s30, 4  ;;  %s2278_s27 = smov 0   ;;  %s1553_s4 = int_to_ptr.hbm [resolvable:$true] %s1552_s4 }
 0x3aa   : > { %1910 = dma.general (%p2478_p10), %s1551_s25, 512, %s1553_s4, %s1518_s17, %s2277_s18, [#allocation21], %s2278_s27, 0  }
 0x3ab   : > { %s1869_s19 = sshll.u32 %s2393_s13, 5  ;;  %s1590_s24 = sshll.u32 %s3578_s5, 4  ;;  %s1591_s24 = int_to_ptr.vmem [resolvable:$true] %s1590_s24 }
 0x3ac   : > { %s3955_s0 = sld [smem:[#allocation55_spill]]  ;;  %s2279_s17 = smov 512  }
 0x3ad   : > { %1911 = sst [smem:[#allocation23]] (%p2478_p10), %s2279_s17  ;;  %s2280_s25 = smov 3072  }
 0x3ae   : > { %1912 = sst [smem:[#allocation23 + $0x1]] (%p2478_p10), %s2280_s25  ;;  %s2281_s4 = smov 4  }
 0x3af   : > { %1913 = sst [smem:[#allocation23 + $0x2]] (%p2478_p10), %s2281_s4  ;;  %s2282_s22 = smov 128  }
 0x3b0   : > { %1914 = sst [smem:[#allocation23 + $0x3]] (%p2478_p10), %s2282_s22  ;;  %s2283_s5 = smov 8  }
 0x3b1   : > { %1915 = sst [smem:[#allocation23 + $0x4]] (%p2478_p10), %s2282_s22  ;;  %s2284_s16 = smov [#allocation22]  }
 0x3b2   : > { %s1579_s30 = scalar_lea.hbm %s3955_s0, %s1869_s19  ;;  %1916 = sst [smem:[#allocation23 + $0x5]] (%p2478_p10), %s2283_s5 }
 0x3b3   : > { %s1592_s15 = sshll.u32 %s1579_s30, 4  ;;  %s2285_s11 = smov 0   ;;  %s1593_s15 = int_to_ptr.hbm [resolvable:$true] %s1592_s15 }
 0x3b4   : > { %1917 = dma.general (%p2478_p10), %s1591_s24, 1024, %s1593_s15, %s3785_s26, %s2284_s16, [#allocation23], %s2285_s11, 0  }
 0x3b5   : > { %s3956_s27 = sld [smem:[#allocation56_spill]]  ;;  %s1630_s9 = sshll.u32 %s3757_s14, 4  ;;  %s1631_s9 = int_to_ptr.vmem [resolvable:$true] %s1630_s9 }
 0x3b6   : > { %s2286_s24 = smov 256   ;;  %s2287_s13 = smov 1536  }
 0x3b7   : > { %1918 = sst [smem:[#allocation25]] (%p2478_p10), %s2286_s24  ;;  %s2288_s0 = smov 2  }
 0x3b8   : > { %1919 = sst [smem:[#allocation25 + $0x1]] (%p2478_p10), %s2287_s13  ;;  %s2289_s30 = smov 128  }
 0x3b9   : > { %1920 = sst [smem:[#allocation25 + $0x2]] (%p2478_p10), %s2288_s0  ;;  %s2290_s14 = smov 8  }
 0x3ba   : > { %1921 = sst [smem:[#allocation25 + $0x3]] (%p2478_p10), %s2289_s30  ;;  %s2292_s15 = smov 0  }
 0x3bb   : > { %s1619_s19 = scalar_lea.hbm %s3956_s27, %s1868_s20  ;;  %1922 = sst [smem:[#allocation25 + $0x4]] (%p2478_p10), %s2289_s30 }
 0x3bc   : > { %s1632_s6 = sshll.u32 %s1619_s19, 4  ;;  %1923 = sst [smem:[#allocation25 + $0x5]] (%p2478_p10), %s2290_s14  ;;  %s1633_s6 = int_to_ptr.hbm [resolvable:$true] %s1632_s6 }
 0x3bd   : > { %s2291_s20 = smov [#allocation24]  }
 0x3be   : > { %1924 = dma.general (%p2478_p10), %s1631_s9, 512, %s1633_s6, %s3785_s26, %s2291_s20, [#allocation25], %s2292_s15, 0  }
 0x3bf PF: > { %s3957_s17 = sld [smem:[#allocation38_spill]]  ;;  %p1938_p5 = scmp.ge.s32.totalorder %s2235_s12, 2 }
 0x3c1   : > { %p1929_p2 = pnand %p1938_p5, %p2482_p3 }
 0x3c3   : > { %p1930_p7 = pneg %p1929_p2 }
 0x3c5   : > { %s1660_s4 = sand.u32 1, %s3957_s17  }
 0x3c6   : > { %s1661_s22 = scalar_lea.sflag [#allocation6], %s1660_s4 }
 0x3c7   : > { %2178 = dma.done.wait (%p1930_p7), %s1661_s22, 512  }
 0x3c8   : > { %2180 = vsyncadd (%p1930_p7), %s1661_s22, 4294966784  ;;  %s3959_s5 = sadd.s32 4294967294, %s2235_s12  }
 0x3c9   : > { %s1670_s16 = sand.u32 1, %s3959_s5  }
 0x3ca   : > { %s1671_s11 = scalar_lea.sflag [#allocation12], %s1670_s16 }
 0x3cb   : > { %2182 = dma.done.wait (%p1930_p7), %s1671_s11, 1536  }
 0x3cc   : > { %2184 = vsyncadd (%p1930_p7), %s1671_s11, 4294965760  ;;  %s3960_s12 = sld [smem:[#allocation42_spill]]  ;;  %s3969_s0 = smov %s2203_s28 }
 0x3cd   : > { %s3961_s25 = sld [smem:[#allocation39_spill]]  ;;  %s3970_s28 = smov %s2207_s29 }
 0x3ce   : > { %s3962_s26 = sld [smem:[#allocation40_spill]]  ;;  %s3972_s30 = smov %s2215_s7 }
 0x3cf   : > { %s3963_s27 = sld [smem:[#allocation46_spill]]  ;;  %s3973_s7 = smov %s2219_s8 }
 0x3d0   : > { %s3964_s23 = sld [smem:[#allocation47_spill]]  ;;  %s3975_s9 = smov %s2227_s10 }
 0x3d1   : > { %s3965_s21 = sld [smem:[#allocation44_spill]] }
 0x3d2   : > { %s3966_s18 = sld [smem:[#allocation41_spill]]  ;;  %p34_p10 = scmp.ge.s32.totalorder %s3960_s12, 8  }
 0x3d3   : > { %s3967_s11 = sld [smem:[#allocation43_spill]] }
 0x3d4   :  { %36 = sbr.rel (!%p34_p10) target bundleno = 22 (0x16), region = 164 }
 0x3d6   : > { %s3971_s29 = smov %s3964_s23 }
 0x3d7   : > { %s3974_s8 = smov %s3965_s21 }
 0x3d8   : > { %s3976_s10 = smov %s3966_s18 }
 0x3d9   :  { %1687 = vsyncpa [#allocation5], 1 }
 0x3da   :  { %1689 = vsyncpa [#allocation5 + $0x1], 1 }
 0x3db   :  { %1690 = vsyncpa [#allocation8], 1 }
 0x3dc   :  { %1692 = vsyncpa [#allocation8 + $0x1], 1 }
 0x3dd   :  { %1693 = vsyncpa [#allocation6], 1 }
 0x3de   :  { %1695 = vsyncpa [#allocation6 + $0x1], 1 }
 0x3df   :  { %1696 = vsyncpa [#allocation12], 1 }
 0x3e0   :  { %1698 = vsyncpa [#allocation12 + $0x1], 1 }

</bundles_post_ra>
